<compile_context>
chip_gen: v6e
topology: v6e:2x2x1
jax: 0.10.0
libtpu: 0.0.40
codegen_flags: <defaults>
</compile_context>

<pallas_src>
import jax
import jax.numpy as jnp
from jax.experimental import pallas as pl
from jax.experimental.pallas import tpu as pltpu

HEADS = 4
NEG_SLOPE = 0.2
MASK_BIAS = -1e9


def _gat_layer(x, w2d, attmat, bias, adj_ok):
    """One GATConv(concat=True) layer on a dense-masked adjacency.

    x:      [N, F_in]   node features (f32)
    w2d:    [F_in, H*C] per-head weights, heads concatenated along columns (bf16)
    attmat: [H*C, 2H]   block matrix: col h = att_dst[h], col H+h = att_src[h] (bf16)
    bias:   [1, H*C]    conv bias, added after the head concat (f32)
    adj_ok: [N, N]      bool, True where edge j->i exists (incl. self loops)
    returns [N, H*C] f32
    """
    n, _ = x.shape
    hc = w2d.shape[1]
    c = hc // HEADS

    # Single 32-wide feature transform on the MXU (bf16 in, f32 accumulate).
    xw = jnp.dot(x.astype(jnp.bfloat16), w2d, preferred_element_type=jnp.float32)   # [N, H*C]
    xw_bf = xw.astype(jnp.bfloat16)

    # Both attention logits for all heads in one small matmul.
    logits = jnp.dot(xw_bf, attmat, preferred_element_type=jnp.float32)             # [N, 2H]
    a_dst = logits[:, :HEADS]                              # [N, H] column h: dst score of node i
    a_src_t = jnp.transpose(logits[:, HEADS:])             # [H, N] row h:    src score of node j

    outs = []
    for h in range(HEADS):
        # s[i, j] = a_dst[i] + a_src[j]   (score of edge j -> i for head h)
        s = a_dst[:, h:h + 1] + a_src_t[h:h + 1, :]        # [N, N]
        s = jnp.where(s > 0, s, NEG_SLOPE * s)             # LeakyReLU(0.2)
        e = jnp.where(adj_ok, s, MASK_BIAS)                # edge mask fused into the select

        # Softmax over source nodes j, normalization deferred until after aggregation.
        m = jnp.max(e, axis=-1, keepdims=True)             # [N, 1]
        p = jnp.exp(e - m)                                  # [N, N] unnormalized
        denom = jnp.sum(p, axis=-1, keepdims=True)          # [N, 1]
        scale = pl.reciprocal(denom, approx=True)            # EUP slot, [N, 1]

        # Aggregate unnormalized probabilities on the MXU, then scale the small result.
        agg = jnp.dot(p.astype(jnp.bfloat16), xw_bf[:, h * c:(h + 1) * c],
                      preferred_element_type=jnp.float32)   # [N, C]
        outs.append(agg * scale)

    # Heads concatenated along the lane axis -> [N, H*C]; conv bias added once.
    return jnp.concatenate(outs, axis=-1) + bias


def _fused_forward_kernel(x_ref, adj_ref,
                          w0_ref, a0_ref, b0_ref,
                          w1_ref, a1_ref, b1_ref,
                          w2_ref, a2_ref, b2_ref,
                          pool_ref, wfc_ref, bfc_ref,
                          out_ref):
    # Derive the bool edge mask ONCE from the int8 adjacency; shared by all 3 layers.
    adj_ok = adj_ref[...] != 0                                             # [N, N] bool

    h = x_ref[...]
    for w_ref, a_ref, b_ref in ((w0_ref, a0_ref, b0_ref),
                                (w1_ref, a1_ref, b1_ref),
                                (w2_ref, a2_ref, b2_ref)):
        h = _gat_layer(h, w_ref[...], a_ref[...], b_ref[...], adj_ok)

    # global_add_pool (one-hot matmul) + final Linear; order chosen to minimize FLOPs.
    classes = wfc_ref.shape[1]
    g = pool_ref.shape[0]
    if classes <= g:
        hw = jnp.dot(h, wfc_ref[...], preferred_element_type=jnp.float32)      # [N, classes]
        y = jnp.dot(pool_ref[...], hw, preferred_element_type=jnp.float32)     # [G, classes]
    else:
        pooled = jnp.dot(pool_ref[...], h, preferred_element_type=jnp.float32)  # [G, H*C]
        y = jnp.dot(pooled, wfc_ref[...], preferred_element_type=jnp.float32)   # [G, classes]
    out_ref[...] = y + bfc_ref[...]


def _vmem_limit_bytes(args, out_shape, n):
    """Scoped-VMEM budget: resident inputs/outputs + live in-kernel temporaries."""
    data = sum(a.size * a.dtype.itemsize for a in args) + out_shape.size * 4
    # Live temporaries: a few [N, N] f32 score/prob buffers + [N, H*C] feature tensors.
    scratch = 6 * n * n * 4 + 8 * n * 4 * HEADS * 32
    budget = 4 * (data + scratch)
    return int(min(max(budget, 16 * 1024 * 1024), 48 * 1024 * 1024))


def gat_forward(x, adj_i8, params, pool, wfc, bfc):
    """Fused forward. params: list of (W2d[F_in,H*C] bf16, attmat[H*C,2H] bf16, bias[1,H*C] f32)."""
    g = pool.shape[0]
    classes = wfc.shape[1]
    n = x.shape[0]
    flat = []
    for (w2d, attmat, b) in params:
        flat += [w2d, attmat, b]
    args = [x, adj_i8] + flat + [pool, wfc, bfc]
    out_shape = jax.ShapeDtypeStruct((g, classes), jnp.float32)
    vmem = pl.BlockSpec(memory_space=pltpu.MemorySpace.VMEM)
    return pl.pallas_call(
        _fused_forward_kernel,
        out_shape=out_shape,
        in_specs=[vmem] * len(args),
        out_specs=vmem,
        compiler_params=pltpu.CompilerParams(
            vmem_limit_bytes=_vmem_limit_bytes(args, out_shape, n)),
    )(*args)


def init_gat_params(key, f_in, hidden, heads):
    k1, k2, k3 = jax.random.split(key, 3)
    w2d = (jax.random.normal(k1, (f_in, heads * hidden), jnp.float32)
           * (1.0 / jnp.sqrt(f_in))).astype(jnp.bfloat16)          # [F_in, H*C]
    att_src = jax.random.normal(k2, (heads, hidden), jnp.float32) * 0.1
    att_dst = jax.random.normal(k3, (heads, hidden), jnp.float32) * 0.1
    # Block matrix producing both logits in one matmul: col h = dst vec, col H+h = src vec.
    attmat = jnp.zeros((heads * hidden, 2 * heads), jnp.float32)
    for h in range(heads):
        attmat = attmat.at[h * hidden:(h + 1) * hidden, h].set(att_dst[h])
        attmat = attmat.at[h * hidden:(h + 1) * hidden, heads + h].set(att_src[h])
    attmat = attmat.astype(jnp.bfloat16)
    bias = jnp.zeros((1, heads * hidden), jnp.float32)              # GATConv bias init: zeros
    return w2d, attmat, bias


def reference_forward(x, adj_bool, params, pool, wfc, bfc):
    """Pure-JAX reference with identical semantics and the same bf16-on-MXU precision
    policy (f32 accumulation); normalization uses an exact divide (kernel: approx recip)."""
    h = x
    for (w2d, attmat, b) in params:
        hc = w2d.shape[1]
        c = hc // HEADS
        xw = jnp.dot(h.astype(jnp.bfloat16), w2d, preferred_element_type=jnp.float32)
        xw_bf = xw.astype(jnp.bfloat16)
        logits = jnp.dot(xw_bf, attmat, preferred_element_type=jnp.float32)
        a_dst = logits[:, :HEADS]
        a_src = logits[:, HEADS:]
        outs = []
        for hh in range(HEADS):
            s = a_dst[:, hh:hh + 1] + a_src[:, hh][None, :]
            s = jnp.where(s > 0, s, NEG_SLOPE * s)
            e = jnp.where(adj_bool, s, MASK_BIAS)
            m = jnp.max(e, axis=-1, keepdims=True)
            p = jnp.exp(e - m)
            denom = jnp.sum(p, axis=-1, keepdims=True)
            agg = jnp.dot(p.astype(jnp.bfloat16), xw_bf[:, hh * c:(hh + 1) * c],
                          preferred_element_type=jnp.float32)
            outs.append(agg / denom)
        h = jnp.concatenate(outs, axis=-1) + b
    return pool @ (h @ wfc) + bfc


if __name__ == "__main__":
    key = jax.random.PRNGKey(0)
    num_features = 16
    hidden_dim = 8          # per-head hidden (small); concat width = hidden_dim * HEADS = 32
    num_classes = 1
    depth = 3
    N = 16                  # total nodes
    G = 2                   # graphs in the batch

    kx, kp = jax.random.split(key)
    x = jax.random.normal(kx, (N, num_features), jnp.float32)

    # deterministic edge structure: within each graph of N//G nodes, ring + chord edges
    src, dst = [], []
    n_per = N // G
    for g in range(G):
        base = g * n_per
        for i in range(n_per):
            src += [base + i, base + i]
            dst += [base + (i + 1) % n_per, base + (i + 3) % n_per]
    edge_index = jnp.array([src, dst], dtype=jnp.int32)            # [2, E]
    batch = jnp.repeat(jnp.arange(G, dtype=jnp.int32), n_per)      # [N]

    # dense adjacency mask: adj[i, j] = True iff edge j -> i; self loops added (GATConv default)
    adj_bool = jnp.zeros((N, N), jnp.bool_)
    adj_bool = adj_bool.at[edge_index[1], edge_index[0]].set(True)
    adj_bool = adj_bool.at[jnp.arange(N), jnp.arange(N)].set(True)
    adj_i8 = adj_bool.astype(jnp.int8)                             # compact mask for the kernel

    # parameters (deterministic init from PRNGKey(0))
    keys = jax.random.split(kp, depth + 1)
    params = []
    f_in = num_features
    for l in range(depth):
        params.append(init_gat_params(keys[l], f_in, hidden_dim, HEADS))
        f_in = hidden_dim * HEADS
    kw, kb = jax.random.split(keys[depth])
    wfc = jax.random.normal(kw, (hidden_dim * HEADS, num_classes), jnp.float32) * 0.1
    bfc = jax.random.normal(kb, (1, num_classes), jnp.float32) * 0.1

    # one-hot pooling matrix for global_add_pool
    pool = (batch[None, :] == jnp.arange(G, dtype=jnp.int32)[:, None]).astype(jnp.float32)

    out = jax.block_until_ready(gat_forward(x, adj_i8, params, pool, wfc, bfc))
    ref = jax.block_until_ready(reference_forward(x, adj_bool, params, pool, wfc, bfc))

    assert out.shape == (G, num_classes)
    assert bool(jnp.all(jnp.isfinite(out)))
    assert bool(jnp.allclose(out, ref, rtol=2e-2, atol=2e-2))
    print("KERNEL_OK")
</pallas_src>

<mosaic_0001>
module attributes {stable_mosaic.version = 11 : i64} {
  func.func @_fused_forward_kernel(%arg0: memref<16x16xf32, #tpu.memory_space<vmem>>, %arg1: memref<16x16xi8, #tpu.memory_space<vmem>>, %arg2: memref<16x32xbf16, #tpu.memory_space<vmem>>, %arg3: memref<32x8xbf16, #tpu.memory_space<vmem>>, %arg4: memref<1x32xf32, #tpu.memory_space<vmem>>, %arg5: memref<32x32xbf16, #tpu.memory_space<vmem>>, %arg6: memref<32x8xbf16, #tpu.memory_space<vmem>>, %arg7: memref<1x32xf32, #tpu.memory_space<vmem>>, %arg8: memref<32x32xbf16, #tpu.memory_space<vmem>>, %arg9: memref<32x8xbf16, #tpu.memory_space<vmem>>, %arg10: memref<1x32xf32, #tpu.memory_space<vmem>>, %arg11: memref<2x16xf32, #tpu.memory_space<vmem>>, %arg12: memref<32x1xf32, #tpu.memory_space<vmem>>, %arg13: memref<1x1xf32, #tpu.memory_space<vmem>>, %arg14: memref<2x1xf32, #tpu.memory_space<vmem>>) attributes {dimension_semantics = [], scalar_prefetch = 0 : i64, scratch_operands = 0 : i64, tpu.core_type = #tpu.core_type<tc>} {
    %c0 = arith.constant 0 : index
    %c0_0 = arith.constant 0 : index
    %0 = vector.load %arg1[%c0, %c0_0] : memref<16x16xi8, #tpu.memory_space<vmem>>, vector<16x16xi8>
    %c0_i8 = arith.constant 0 : i8
    %1 = vector.broadcast %c0_i8 : i8 to vector<16x16xi8>
    %2 = arith.cmpi ne, %0, %1 : vector<16x16xi8>
    %c0_1 = arith.constant 0 : index
    %c0_2 = arith.constant 0 : index
    %3 = vector.load %arg0[%c0_1, %c0_2] : memref<16x16xf32, #tpu.memory_space<vmem>>, vector<16x16xf32>
    %c0_3 = arith.constant 0 : index
    %c0_4 = arith.constant 0 : index
    %4 = vector.load %arg2[%c0_3, %c0_4] : memref<16x32xbf16, #tpu.memory_space<vmem>>, vector<16x32xbf16>
    %c0_5 = arith.constant 0 : index
    %c0_6 = arith.constant 0 : index
    %5 = vector.load %arg3[%c0_5, %c0_6] : memref<32x8xbf16, #tpu.memory_space<vmem>>, vector<32x8xbf16>
    %c0_7 = arith.constant 0 : index
    %c0_8 = arith.constant 0 : index
    %6 = vector.load %arg4[%c0_7, %c0_8] : memref<1x32xf32, #tpu.memory_space<vmem>>, vector<1x32xf32>
    %7 = arith.truncf %3 : vector<16x16xf32> to vector<16x16xbf16>
    %cst = arith.constant dense<0.000000e+00> : vector<16x32xf32>
    %8 = tpu.matmul %7, %4, %cst {dimension_numbers = #tpu.dot_dimension_numbers<[1], [0], [0], [1], [0, 0, 1, 1], [], []>} : vector<16x16xbf16>, vector<16x32xbf16>, vector<16x32xf32> -> vector<16x32xf32>
    %9 = arith.truncf %8 : vector<16x32xf32> to vector<16x32xbf16>
    %cst_9 = arith.constant dense<0.000000e+00> : vector<16x8xf32>
    %10 = tpu.matmul %9, %5, %cst_9 {dimension_numbers = #tpu.dot_dimension_numbers<[1], [0], [0], [1], [0, 0, 1, 1], [], []>} : vector<16x32xbf16>, vector<32x8xbf16>, vector<16x8xf32> -> vector<16x8xf32>
    %11 = vector.extract_strided_slice %10 {offsets = [0, 0], sizes = [16, 4], strides = [1, 1]} : vector<16x8xf32> to vector<16x4xf32>
    %12 = vector.extract_strided_slice %10 {offsets = [0, 4], sizes = [16, 4], strides = [1, 1]} : vector<16x8xf32> to vector<16x4xf32>
    %13 = tpu.transpose %12, [1, 0] : vector<16x4xf32> -> vector<4x16xf32>
    %14 = vector.extract_strided_slice %11 {offsets = [0, 0], sizes = [16, 1], strides = [1, 1]} : vector<16x4xf32> to vector<16x1xf32>
    %15 = vector.extract_strided_slice %13 {offsets = [0, 0], sizes = [1, 16], strides = [1, 1]} : vector<4x16xf32> to vector<1x16xf32>
    %16 = vector.broadcast %14 : vector<16x1xf32> to vector<16x16xf32>
    %17 = vector.broadcast %15 : vector<1x16xf32> to vector<16x16xf32>
    %18 = arith.addf %16, %17 : vector<16x16xf32>
    %cst_10 = arith.constant 0.000000e+00 : f32
    %19 = vector.broadcast %cst_10 : f32 to vector<16x16xf32>
    %20 = arith.cmpf ogt, %18, %19 : vector<16x16xf32>
    %cst_11 = arith.constant 2.000000e-01 : f32
    %21 = vector.broadcast %cst_11 : f32 to vector<16x16xf32>
    %22 = arith.mulf %21, %18 : vector<16x16xf32>
    %23 = arith.select %20, %18, %22 : vector<16x16xi1>, vector<16x16xf32>
    %cst_12 = arith.constant -1.000000e+09 : f32
    %24 = vector.broadcast %cst_12 : f32 to vector<16x16xf32>
    %25 = arith.select %2, %23, %24 : vector<16x16xi1>, vector<16x16xf32>
    %cst_13 = arith.constant dense<0xFF800000> : vector<16xf32>
    %26 = vector.multi_reduction <maximumf>, %25, %cst_13 [1] : vector<16x16xf32> to vector<16xf32>
    %27 = vector.shape_cast %26 : vector<16xf32> to vector<16x1xf32>
    %28 = vector.broadcast %27 : vector<16x1xf32> to vector<16x16xf32>
    %29 = arith.subf %25, %28 : vector<16x16xf32>
    %30 = math.exp %29 : vector<16x16xf32>
    %cst_14 = arith.constant dense<0.000000e+00> : vector<16xf32>
    %31 = vector.multi_reduction <add>, %30, %cst_14 [1] : vector<16x16xf32> to vector<16xf32>
    %32 = vector.shape_cast %31 : vector<16xf32> to vector<16x1xf32>
    %33 = tpu.reciprocal %32 {approx = true} : vector<16x1xf32> -> vector<16x1xf32>
    %34 = arith.truncf %30 : vector<16x16xf32> to vector<16x16xbf16>
    %35 = vector.extract_strided_slice %9 {offsets = [0, 0], sizes = [16, 8], strides = [1, 1]} : vector<16x32xbf16> to vector<16x8xbf16>
    %cst_15 = arith.constant dense<0.000000e+00> : vector<16x8xf32>
    %36 = tpu.matmul %34, %35, %cst_15 {dimension_numbers = #tpu.dot_dimension_numbers<[1], [0], [0], [1], [0, 0, 1, 1], [], []>} : vector<16x16xbf16>, vector<16x8xbf16>, vector<16x8xf32> -> vector<16x8xf32>
    %37 = vector.broadcast %33 : vector<16x1xf32> to vector<16x8xf32>
    %38 = arith.mulf %36, %37 : vector<16x8xf32>
    %39 = vector.extract_strided_slice %11 {offsets = [0, 1], sizes = [16, 1], strides = [1, 1]} : vector<16x4xf32> to vector<16x1xf32>
    %40 = vector.extract_strided_slice %13 {offsets = [1, 0], sizes = [1, 16], strides = [1, 1]} : vector<4x16xf32> to vector<1x16xf32>
    %41 = vector.broadcast %39 : vector<16x1xf32> to vector<16x16xf32>
    %42 = vector.broadcast %40 : vector<1x16xf32> to vector<16x16xf32>
    %43 = arith.addf %41, %42 : vector<16x16xf32>
    %cst_16 = arith.constant 0.000000e+00 : f32
    %44 = vector.broadcast %cst_16 : f32 to vector<16x16xf32>
    %45 = arith.cmpf ogt, %43, %44 : vector<16x16xf32>
    %cst_17 = arith.constant 2.000000e-01 : f32
    %46 = vector.broadcast %cst_17 : f32 to vector<16x16xf32>
    %47 = arith.mulf %46, %43 : vector<16x16xf32>
    %48 = arith.select %45, %43, %47 : vector<16x16xi1>, vector<16x16xf32>
    %cst_18 = arith.constant -1.000000e+09 : f32
    %49 = vector.broadcast %cst_18 : f32 to vector<16x16xf32>
    %50 = arith.select %2, %48, %49 : vector<16x16xi1>, vector<16x16xf32>
    %cst_19 = arith.constant dense<0xFF800000> : vector<16xf32>
    %51 = vector.multi_reduction <maximumf>, %50, %cst_19 [1] : vector<16x16xf32> to vector<16xf32>
    %52 = vector.shape_cast %51 : vector<16xf32> to vector<16x1xf32>
    %53 = vector.broadcast %52 : vector<16x1xf32> to vector<16x16xf32>
    %54 = arith.subf %50, %53 : vector<16x16xf32>
    %55 = math.exp %54 : vector<16x16xf32>
    %cst_20 = arith.constant dense<0.000000e+00> : vector<16xf32>
    %56 = vector.multi_reduction <add>, %55, %cst_20 [1] : vector<16x16xf32> to vector<16xf32>
    %57 = vector.shape_cast %56 : vector<16xf32> to vector<16x1xf32>
    %58 = tpu.reciprocal %57 {approx = true} : vector<16x1xf32> -> vector<16x1xf32>
    %59 = arith.truncf %55 : vector<16x16xf32> to vector<16x16xbf16>
    %60 = vector.extract_strided_slice %9 {offsets = [0, 8], sizes = [16, 8], strides = [1, 1]} : vector<16x32xbf16> to vector<16x8xbf16>
    %cst_21 = arith.constant dense<0.000000e+00> : vector<16x8xf32>
    %61 = tpu.matmul %59, %60, %cst_21 {dimension_numbers = #tpu.dot_dimension_numbers<[1], [0], [0], [1], [0, 0, 1, 1], [], []>} : vector<16x16xbf16>, vector<16x8xbf16>, vector<16x8xf32> -> vector<16x8xf32>
    %62 = vector.broadcast %58 : vector<16x1xf32> to vector<16x8xf32>
    %63 = arith.mulf %61, %62 : vector<16x8xf32>
    %64 = vector.extract_strided_slice %11 {offsets = [0, 2], sizes = [16, 1], strides = [1, 1]} : vector<16x4xf32> to vector<16x1xf32>
    %65 = vector.extract_strided_slice %13 {offsets = [2, 0], sizes = [1, 16], strides = [1, 1]} : vector<4x16xf32> to vector<1x16xf32>
    %66 = vector.broadcast %64 : vector<16x1xf32> to vector<16x16xf32>
    %67 = vector.broadcast %65 : vector<1x16xf32> to vector<16x16xf32>
    %68 = arith.addf %66, %67 : vector<16x16xf32>
    %cst_22 = arith.constant 0.000000e+00 : f32
    %69 = vector.broadcast %cst_22 : f32 to vector<16x16xf32>
    %70 = arith.cmpf ogt, %68, %69 : vector<16x16xf32>
    %cst_23 = arith.constant 2.000000e-01 : f32
    %71 = vector.broadcast %cst_23 : f32 to vector<16x16xf32>
    %72 = arith.mulf %71, %68 : vector<16x16xf32>
    %73 = arith.select %70, %68, %72 : vector<16x16xi1>, vector<16x16xf32>
    %cst_24 = arith.constant -1.000000e+09 : f32
    %74 = vector.broadcast %cst_24 : f32 to vector<16x16xf32>
    %75 = arith.select %2, %73, %74 : vector<16x16xi1>, vector<16x16xf32>
    %cst_25 = arith.constant dense<0xFF800000> : vector<16xf32>
    %76 = vector.multi_reduction <maximumf>, %75, %cst_25 [1] : vector<16x16xf32> to vector<16xf32>
    %77 = vector.shape_cast %76 : vector<16xf32> to vector<16x1xf32>
    %78 = vector.broadcast %77 : vector<16x1xf32> to vector<16x16xf32>
    %79 = arith.subf %75, %78 : vector<16x16xf32>
    %80 = math.exp %79 : vector<16x16xf32>
    %cst_26 = arith.constant dense<0.000000e+00> : vector<16xf32>
    %81 = vector.multi_reduction <add>, %80, %cst_26 [1] : vector<16x16xf32> to vector<16xf32>
    %82 = vector.shape_cast %81 : vector<16xf32> to vector<16x1xf32>
    %83 = tpu.reciprocal %82 {approx = true} : vector<16x1xf32> -> vector<16x1xf32>
    %84 = arith.truncf %80 : vector<16x16xf32> to vector<16x16xbf16>
    %85 = vector.extract_strided_slice %9 {offsets = [0, 16], sizes = [16, 8], strides = [1, 1]} : vector<16x32xbf16> to vector<16x8xbf16>
    %cst_27 = arith.constant dense<0.000000e+00> : vector<16x8xf32>
    %86 = tpu.matmul %84, %85, %cst_27 {dimension_numbers = #tpu.dot_dimension_numbers<[1], [0], [0], [1], [0, 0, 1, 1], [], []>} : vector<16x16xbf16>, vector<16x8xbf16>, vector<16x8xf32> -> vector<16x8xf32>
    %87 = vector.broadcast %83 : vector<16x1xf32> to vector<16x8xf32>
    %88 = arith.mulf %86, %87 : vector<16x8xf32>
    %89 = vector.extract_strided_slice %11 {offsets = [0, 3], sizes = [16, 1], strides = [1, 1]} : vector<16x4xf32> to vector<16x1xf32>
    %90 = vector.extract_strided_slice %13 {offsets = [3, 0], sizes = [1, 16], strides = [1, 1]} : vector<4x16xf32> to vector<1x16xf32>
    %91 = vector.broadcast %89 : vector<16x1xf32> to vector<16x16xf32>
    %92 = vector.broadcast %90 : vector<1x16xf32> to vector<16x16xf32>
    %93 = arith.addf %91, %92 : vector<16x16xf32>
    %cst_28 = arith.constant 0.000000e+00 : f32
    %94 = vector.broadcast %cst_28 : f32 to vector<16x16xf32>
    %95 = arith.cmpf ogt, %93, %94 : vector<16x16xf32>
    %cst_29 = arith.constant 2.000000e-01 : f32
    %96 = vector.broadcast %cst_29 : f32 to vector<16x16xf32>
    %97 = arith.mulf %96, %93 : vector<16x16xf32>
    %98 = arith.select %95, %93, %97 : vector<16x16xi1>, vector<16x16xf32>
    %cst_30 = arith.constant -1.000000e+09 : f32
    %99 = vector.broadcast %cst_30 : f32 to vector<16x16xf32>
    %100 = arith.select %2, %98, %99 : vector<16x16xi1>, vector<16x16xf32>
    %cst_31 = arith.constant dense<0xFF800000> : vector<16xf32>
    %101 = vector.multi_reduction <maximumf>, %100, %cst_31 [1] : vector<16x16xf32> to vector<16xf32>
    %102 = vector.shape_cast %101 : vector<16xf32> to vector<16x1xf32>
    %103 = vector.broadcast %102 : vector<16x1xf32> to vector<16x16xf32>
    %104 = arith.subf %100, %103 : vector<16x16xf32>
    %105 = math.exp %104 : vector<16x16xf32>
    %cst_32 = arith.constant dense<0.000000e+00> : vector<16xf32>
    %106 = vector.multi_reduction <add>, %105, %cst_32 [1] : vector<16x16xf32> to vector<16xf32>
    %107 = vector.shape_cast %106 : vector<16xf32> to vector<16x1xf32>
    %108 = tpu.reciprocal %107 {approx = true} : vector<16x1xf32> -> vector<16x1xf32>
    %109 = arith.truncf %105 : vector<16x16xf32> to vector<16x16xbf16>
    %110 = vector.extract_strided_slice %9 {offsets = [0, 24], sizes = [16, 8], strides = [1, 1]} : vector<16x32xbf16> to vector<16x8xbf16>
    %cst_33 = arith.constant dense<0.000000e+00> : vector<16x8xf32>
    %111 = tpu.matmul %109, %110, %cst_33 {dimension_numbers = #tpu.dot_dimension_numbers<[1], [0], [0], [1], [0, 0, 1, 1], [], []>} : vector<16x16xbf16>, vector<16x8xbf16>, vector<16x8xf32> -> vector<16x8xf32>
    %112 = vector.broadcast %108 : vector<16x1xf32> to vector<16x8xf32>
    %113 = arith.mulf %111, %112 : vector<16x8xf32>
    %114 = tpu.concatenate %38, %63, %88, %113 in 1 : vector<16x8xf32>, vector<16x8xf32>, vector<16x8xf32>, vector<16x8xf32> -> vector<16x32xf32>
    %115 = vector.broadcast %6 : vector<1x32xf32> to vector<16x32xf32>
    %116 = arith.addf %114, %115 : vector<16x32xf32>
    %c0_34 = arith.constant 0 : index
    %c0_35 = arith.constant 0 : index
    %117 = vector.load %arg5[%c0_34, %c0_35] : memref<32x32xbf16, #tpu.memory_space<vmem>>, vector<32x32xbf16>
    %c0_36 = arith.constant 0 : index
    %c0_37 = arith.constant 0 : index
    %118 = vector.load %arg6[%c0_36, %c0_37] : memref<32x8xbf16, #tpu.memory_space<vmem>>, vector<32x8xbf16>
    %c0_38 = arith.constant 0 : index
    %c0_39 = arith.constant 0 : index
    %119 = vector.load %arg7[%c0_38, %c0_39] : memref<1x32xf32, #tpu.memory_space<vmem>>, vector<1x32xf32>
    %120 = arith.truncf %116 : vector<16x32xf32> to vector<16x32xbf16>
    %cst_40 = arith.constant dense<0.000000e+00> : vector<16x32xf32>
    %121 = tpu.matmul %120, %117, %cst_40 {dimension_numbers = #tpu.dot_dimension_numbers<[1], [0], [0], [1], [0, 0, 1, 1], [], []>} : vector<16x32xbf16>, vector<32x32xbf16>, vector<16x32xf32> -> vector<16x32xf32>
    %122 = arith.truncf %121 : vector<16x32xf32> to vector<16x32xbf16>
    %cst_41 = arith.constant dense<0.000000e+00> : vector<16x8xf32>
    %123 = tpu.matmul %122, %118, %cst_41 {dimension_numbers = #tpu.dot_dimension_numbers<[1], [0], [0], [1], [0, 0, 1, 1], [], []>} : vector<16x32xbf16>, vector<32x8xbf16>, vector<16x8xf32> -> vector<16x8xf32>
    %124 = vector.extract_strided_slice %123 {offsets = [0, 0], sizes = [16, 4], strides = [1, 1]} : vector<16x8xf32> to vector<16x4xf32>
    %125 = vector.extract_strided_slice %123 {offsets = [0, 4], sizes = [16, 4], strides = [1, 1]} : vector<16x8xf32> to vector<16x4xf32>
    %126 = tpu.transpose %125, [1, 0] : vector<16x4xf32> -> vector<4x16xf32>
    %127 = vector.extract_strided_slice %124 {offsets = [0, 0], sizes = [16, 1], strides = [1, 1]} : vector<16x4xf32> to vector<16x1xf32>
    %128 = vector.extract_strided_slice %126 {offsets = [0, 0], sizes = [1, 16], strides = [1, 1]} : vector<4x16xf32> to vector<1x16xf32>
    %129 = vector.broadcast %127 : vector<16x1xf32> to vector<16x16xf32>
    %130 = vector.broadcast %128 : vector<1x16xf32> to vector<16x16xf32>
    %131 = arith.addf %129, %130 : vector<16x16xf32>
    %cst_42 = arith.constant 0.000000e+00 : f32
    %132 = vector.broadcast %cst_42 : f32 to vector<16x16xf32>
    %133 = arith.cmpf ogt, %131, %132 : vector<16x16xf32>
    %cst_43 = arith.constant 2.000000e-01 : f32
    %134 = vector.broadcast %cst_43 : f32 to vector<16x16xf32>
    %135 = arith.mulf %134, %131 : vector<16x16xf32>
    %136 = arith.select %133, %131, %135 : vector<16x16xi1>, vector<16x16xf32>
    %cst_44 = arith.constant -1.000000e+09 : f32
    %137 = vector.broadcast %cst_44 : f32 to vector<16x16xf32>
    %138 = arith.select %2, %136, %137 : vector<16x16xi1>, vector<16x16xf32>
    %cst_45 = arith.constant dense<0xFF800000> : vector<16xf32>
    %139 = vector.multi_reduction <maximumf>, %138, %cst_45 [1] : vector<16x16xf32> to vector<16xf32>
    %140 = vector.shape_cast %139 : vector<16xf32> to vector<16x1xf32>
    %141 = vector.broadcast %140 : vector<16x1xf32> to vector<16x16xf32>
    %142 = arith.subf %138, %141 : vector<16x16xf32>
    %143 = math.exp %142 : vector<16x16xf32>
    %cst_46 = arith.constant dense<0.000000e+00> : vector<16xf32>
    %144 = vector.multi_reduction <add>, %143, %cst_46 [1] : vector<16x16xf32> to vector<16xf32>
    %145 = vector.shape_cast %144 : vector<16xf32> to vector<16x1xf32>
    %146 = tpu.reciprocal %145 {approx = true} : vector<16x1xf32> -> vector<16x1xf32>
    %147 = arith.truncf %143 : vector<16x16xf32> to vector<16x16xbf16>
    %148 = vector.extract_strided_slice %122 {offsets = [0, 0], sizes = [16, 8], strides = [1, 1]} : vector<16x32xbf16> to vector<16x8xbf16>
    %cst_47 = arith.constant dense<0.000000e+00> : vector<16x8xf32>
    %149 = tpu.matmul %147, %148, %cst_47 {dimension_numbers = #tpu.dot_dimension_numbers<[1], [0], [0], [1], [0, 0, 1, 1], [], []>} : vector<16x16xbf16>, vector<16x8xbf16>, vector<16x8xf32> -> vector<16x8xf32>
    %150 = vector.broadcast %146 : vector<16x1xf32> to vector<16x8xf32>
    %151 = arith.mulf %149, %150 : vector<16x8xf32>
    %152 = vector.extract_strided_slice %124 {offsets = [0, 1], sizes = [16, 1], strides = [1, 1]} : vector<16x4xf32> to vector<16x1xf32>
    %153 = vector.extract_strided_slice %126 {offsets = [1, 0], sizes = [1, 16], strides = [1, 1]} : vector<4x16xf32> to vector<1x16xf32>
    %154 = vector.broadcast %152 : vector<16x1xf32> to vector<16x16xf32>
    %155 = vector.broadcast %153 : vector<1x16xf32> to vector<16x16xf32>
    %156 = arith.addf %154, %155 : vector<16x16xf32>
    %cst_48 = arith.constant 0.000000e+00 : f32
    %157 = vector.broadcast %cst_48 : f32 to vector<16x16xf32>
    %158 = arith.cmpf ogt, %156, %157 : vector<16x16xf32>
    %cst_49 = arith.constant 2.000000e-01 : f32
    %159 = vector.broadcast %cst_49 : f32 to vector<16x16xf32>
    %160 = arith.mulf %159, %156 : vector<16x16xf32>
    %161 = arith.select %158, %156, %160 : vector<16x16xi1>, vector<16x16xf32>
    %cst_50 = arith.constant -1.000000e+09 : f32
    %162 = vector.broadcast %cst_50 : f32 to vector<16x16xf32>
    %163 = arith.select %2, %161, %162 : vector<16x16xi1>, vector<16x16xf32>
    %cst_51 = arith.constant dense<0xFF800000> : vector<16xf32>
    %164 = vector.multi_reduction <maximumf>, %163, %cst_51 [1] : vector<16x16xf32> to vector<16xf32>
    %165 = vector.shape_cast %164 : vector<16xf32> to vector<16x1xf32>
    %166 = vector.broadcast %165 : vector<16x1xf32> to vector<16x16xf32>
    %167 = arith.subf %163, %166 : vector<16x16xf32>
    %168 = math.exp %167 : vector<16x16xf32>
    %cst_52 = arith.constant dense<0.000000e+00> : vector<16xf32>
    %169 = vector.multi_reduction <add>, %168, %cst_52 [1] : vector<16x16xf32> to vector<16xf32>
    %170 = vector.shape_cast %169 : vector<16xf32> to vector<16x1xf32>
    %171 = tpu.reciprocal %170 {approx = true} : vector<16x1xf32> -> vector<16x1xf32>
    %172 = arith.truncf %168 : vector<16x16xf32> to vector<16x16xbf16>
    %173 = vector.extract_strided_slice %122 {offsets = [0, 8], sizes = [16, 8], strides = [1, 1]} : vector<16x32xbf16> to vector<16x8xbf16>
    %cst_53 = arith.constant dense<0.000000e+00> : vector<16x8xf32>
    %174 = tpu.matmul %172, %173, %cst_53 {dimension_numbers = #tpu.dot_dimension_numbers<[1], [0], [0], [1], [0, 0, 1, 1], [], []>} : vector<16x16xbf16>, vector<16x8xbf16>, vector<16x8xf32> -> vector<16x8xf32>
    %175 = vector.broadcast %171 : vector<16x1xf32> to vector<16x8xf32>
    %176 = arith.mulf %174, %175 : vector<16x8xf32>
    %177 = vector.extract_strided_slice %124 {offsets = [0, 2], sizes = [16, 1], strides = [1, 1]} : vector<16x4xf32> to vector<16x1xf32>
    %178 = vector.extract_strided_slice %126 {offsets = [2, 0], sizes = [1, 16], strides = [1, 1]} : vector<4x16xf32> to vector<1x16xf32>
    %179 = vector.broadcast %177 : vector<16x1xf32> to vector<16x16xf32>
    %180 = vector.broadcast %178 : vector<1x16xf32> to vector<16x16xf32>
    %181 = arith.addf %179, %180 : vector<16x16xf32>
    %cst_54 = arith.constant 0.000000e+00 : f32
    %182 = vector.broadcast %cst_54 : f32 to vector<16x16xf32>
    %183 = arith.cmpf ogt, %181, %182 : vector<16x16xf32>
    %cst_55 = arith.constant 2.000000e-01 : f32
    %184 = vector.broadcast %cst_55 : f32 to vector<16x16xf32>
    %185 = arith.mulf %184, %181 : vector<16x16xf32>
    %186 = arith.select %183, %181, %185 : vector<16x16xi1>, vector<16x16xf32>
    %cst_56 = arith.constant -1.000000e+09 : f32
    %187 = vector.broadcast %cst_56 : f32 to vector<16x16xf32>
    %188 = arith.select %2, %186, %187 : vector<16x16xi1>, vector<16x16xf32>
    %cst_57 = arith.constant dense<0xFF800000> : vector<16xf32>
    %189 = vector.multi_reduction <maximumf>, %188, %cst_57 [1] : vector<16x16xf32> to vector<16xf32>
    %190 = vector.shape_cast %189 : vector<16xf32> to vector<16x1xf32>
    %191 = vector.broadcast %190 : vector<16x1xf32> to vector<16x16xf32>
    %192 = arith.subf %188, %191 : vector<16x16xf32>
    %193 = math.exp %192 : vector<16x16xf32>
    %cst_58 = arith.constant dense<0.000000e+00> : vector<16xf32>
    %194 = vector.multi_reduction <add>, %193, %cst_58 [1] : vector<16x16xf32> to vector<16xf32>
    %195 = vector.shape_cast %194 : vector<16xf32> to vector<16x1xf32>
    %196 = tpu.reciprocal %195 {approx = true} : vector<16x1xf32> -> vector<16x1xf32>
    %197 = arith.truncf %193 : vector<16x16xf32> to vector<16x16xbf16>
    %198 = vector.extract_strided_slice %122 {offsets = [0, 16], sizes = [16, 8], strides = [1, 1]} : vector<16x32xbf16> to vector<16x8xbf16>
    %cst_59 = arith.constant dense<0.000000e+00> : vector<16x8xf32>
    %199 = tpu.matmul %197, %198, %cst_59 {dimension_numbers = #tpu.dot_dimension_numbers<[1], [0], [0], [1], [0, 0, 1, 1], [], []>} : vector<16x16xbf16>, vector<16x8xbf16>, vector<16x8xf32> -> vector<16x8xf32>
    %200 = vector.broadcast %196 : vector<16x1xf32> to vector<16x8xf32>
    %201 = arith.mulf %199, %200 : vector<16x8xf32>
    %202 = vector.extract_strided_slice %124 {offsets = [0, 3], sizes = [16, 1], strides = [1, 1]} : vector<16x4xf32> to vector<16x1xf32>
    %203 = vector.extract_strided_slice %126 {offsets = [3, 0], sizes = [1, 16], strides = [1, 1]} : vector<4x16xf32> to vector<1x16xf32>
    %204 = vector.broadcast %202 : vector<16x1xf32> to vector<16x16xf32>
    %205 = vector.broadcast %203 : vector<1x16xf32> to vector<16x16xf32>
    %206 = arith.addf %204, %205 : vector<16x16xf32>
    %cst_60 = arith.constant 0.000000e+00 : f32
    %207 = vector.broadcast %cst_60 : f32 to vector<16x16xf32>
    %208 = arith.cmpf ogt, %206, %207 : vector<16x16xf32>
    %cst_61 = arith.constant 2.000000e-01 : f32
    %209 = vector.broadcast %cst_61 : f32 to vector<16x16xf32>
    %210 = arith.mulf %209, %206 : vector<16x16xf32>
    %211 = arith.select %208, %206, %210 : vector<16x16xi1>, vector<16x16xf32>
    %cst_62 = arith.constant -1.000000e+09 : f32
    %212 = vector.broadcast %cst_62 : f32 to vector<16x16xf32>
    %213 = arith.select %2, %211, %212 : vector<16x16xi1>, vector<16x16xf32>
    %cst_63 = arith.constant dense<0xFF800000> : vector<16xf32>
    %214 = vector.multi_reduction <maximumf>, %213, %cst_63 [1] : vector<16x16xf32> to vector<16xf32>
    %215 = vector.shape_cast %214 : vector<16xf32> to vector<16x1xf32>
    %216 = vector.broadcast %215 : vector<16x1xf32> to vector<16x16xf32>
    %217 = arith.subf %213, %216 : vector<16x16xf32>
    %218 = math.exp %217 : vector<16x16xf32>
    %cst_64 = arith.constant dense<0.000000e+00> : vector<16xf32>
    %219 = vector.multi_reduction <add>, %218, %cst_64 [1] : vector<16x16xf32> to vector<16xf32>
    %220 = vector.shape_cast %219 : vector<16xf32> to vector<16x1xf32>
    %221 = tpu.reciprocal %220 {approx = true} : vector<16x1xf32> -> vector<16x1xf32>
    %222 = arith.truncf %218 : vector<16x16xf32> to vector<16x16xbf16>
    %223 = vector.extract_strided_slice %122 {offsets = [0, 24], sizes = [16, 8], strides = [1, 1]} : vector<16x32xbf16> to vector<16x8xbf16>
    %cst_65 = arith.constant dense<0.000000e+00> : vector<16x8xf32>
    %224 = tpu.matmul %222, %223, %cst_65 {dimension_numbers = #tpu.dot_dimension_numbers<[1], [0], [0], [1], [0, 0, 1, 1], [], []>} : vector<16x16xbf16>, vector<16x8xbf16>, vector<16x8xf32> -> vector<16x8xf32>
    %225 = vector.broadcast %221 : vector<16x1xf32> to vector<16x8xf32>
    %226 = arith.mulf %224, %225 : vector<16x8xf32>
    %227 = tpu.concatenate %151, %176, %201, %226 in 1 : vector<16x8xf32>, vector<16x8xf32>, vector<16x8xf32>, vector<16x8xf32> -> vector<16x32xf32>
    %228 = vector.broadcast %119 : vector<1x32xf32> to vector<16x32xf32>
    %229 = arith.addf %227, %228 : vector<16x32xf32>
    %c0_66 = arith.constant 0 : index
    %c0_67 = arith.constant 0 : index
    %230 = vector.load %arg8[%c0_66, %c0_67] : memref<32x32xbf16, #tpu.memory_space<vmem>>, vector<32x32xbf16>
    %c0_68 = arith.constant 0 : index
    %c0_69 = arith.constant 0 : index
    %231 = vector.load %arg9[%c0_68, %c0_69] : memref<32x8xbf16, #tpu.memory_space<vmem>>, vector<32x8xbf16>
    %c0_70 = arith.constant 0 : index
    %c0_71 = arith.constant 0 : index
    %232 = vector.load %arg10[%c0_70, %c0_71] : memref<1x32xf32, #tpu.memory_space<vmem>>, vector<1x32xf32>
    %233 = arith.truncf %229 : vector<16x32xf32> to vector<16x32xbf16>
    %cst_72 = arith.constant dense<0.000000e+00> : vector<16x32xf32>
    %234 = tpu.matmul %233, %230, %cst_72 {dimension_numbers = #tpu.dot_dimension_numbers<[1], [0], [0], [1], [0, 0, 1, 1], [], []>} : vector<16x32xbf16>, vector<32x32xbf16>, vector<16x32xf32> -> vector<16x32xf32>
    %235 = arith.truncf %234 : vector<16x32xf32> to vector<16x32xbf16>
    %cst_73 = arith.constant dense<0.000000e+00> : vector<16x8xf32>
    %236 = tpu.matmul %235, %231, %cst_73 {dimension_numbers = #tpu.dot_dimension_numbers<[1], [0], [0], [1], [0, 0, 1, 1], [], []>} : vector<16x32xbf16>, vector<32x8xbf16>, vector<16x8xf32> -> vector<16x8xf32>
    %237 = vector.extract_strided_slice %236 {offsets = [0, 0], sizes = [16, 4], strides = [1, 1]} : vector<16x8xf32> to vector<16x4xf32>
    %238 = vector.extract_strided_slice %236 {offsets = [0, 4], sizes = [16, 4], strides = [1, 1]} : vector<16x8xf32> to vector<16x4xf32>
    %239 = tpu.transpose %238, [1, 0] : vector<16x4xf32> -> vector<4x16xf32>
    %240 = vector.extract_strided_slice %237 {offsets = [0, 0], sizes = [16, 1], strides = [1, 1]} : vector<16x4xf32> to vector<16x1xf32>
    %241 = vector.extract_strided_slice %239 {offsets = [0, 0], sizes = [1, 16], strides = [1, 1]} : vector<4x16xf32> to vector<1x16xf32>
    %242 = vector.broadcast %240 : vector<16x1xf32> to vector<16x16xf32>
    %243 = vector.broadcast %241 : vector<1x16xf32> to vector<16x16xf32>
    %244 = arith.addf %242, %243 : vector<16x16xf32>
    %cst_74 = arith.constant 0.000000e+00 : f32
    %245 = vector.broadcast %cst_74 : f32 to vector<16x16xf32>
    %246 = arith.cmpf ogt, %244, %245 : vector<16x16xf32>
    %cst_75 = arith.constant 2.000000e-01 : f32
    %247 = vector.broadcast %cst_75 : f32 to vector<16x16xf32>
    %248 = arith.mulf %247, %244 : vector<16x16xf32>
    %249 = arith.select %246, %244, %248 : vector<16x16xi1>, vector<16x16xf32>
    %cst_76 = arith.constant -1.000000e+09 : f32
    %250 = vector.broadcast %cst_76 : f32 to vector<16x16xf32>
    %251 = arith.select %2, %249, %250 : vector<16x16xi1>, vector<16x16xf32>
    %cst_77 = arith.constant dense<0xFF800000> : vector<16xf32>
    %252 = vector.multi_reduction <maximumf>, %251, %cst_77 [1] : vector<16x16xf32> to vector<16xf32>
    %253 = vector.shape_cast %252 : vector<16xf32> to vector<16x1xf32>
    %254 = vector.broadcast %253 : vector<16x1xf32> to vector<16x16xf32>
    %255 = arith.subf %251, %254 : vector<16x16xf32>
    %256 = math.exp %255 : vector<16x16xf32>
    %cst_78 = arith.constant dense<0.000000e+00> : vector<16xf32>
    %257 = vector.multi_reduction <add>, %256, %cst_78 [1] : vector<16x16xf32> to vector<16xf32>
    %258 = vector.shape_cast %257 : vector<16xf32> to vector<16x1xf32>
    %259 = tpu.reciprocal %258 {approx = true} : vector<16x1xf32> -> vector<16x1xf32>
    %260 = arith.truncf %256 : vector<16x16xf32> to vector<16x16xbf16>
    %261 = vector.extract_strided_slice %235 {offsets = [0, 0], sizes = [16, 8], strides = [1, 1]} : vector<16x32xbf16> to vector<16x8xbf16>
    %cst_79 = arith.constant dense<0.000000e+00> : vector<16x8xf32>
    %262 = tpu.matmul %260, %261, %cst_79 {dimension_numbers = #tpu.dot_dimension_numbers<[1], [0], [0], [1], [0, 0, 1, 1], [], []>} : vector<16x16xbf16>, vector<16x8xbf16>, vector<16x8xf32> -> vector<16x8xf32>
    %263 = vector.broadcast %259 : vector<16x1xf32> to vector<16x8xf32>
    %264 = arith.mulf %262, %263 : vector<16x8xf32>
    %265 = vector.extract_strided_slice %237 {offsets = [0, 1], sizes = [16, 1], strides = [1, 1]} : vector<16x4xf32> to vector<16x1xf32>
    %266 = vector.extract_strided_slice %239 {offsets = [1, 0], sizes = [1, 16], strides = [1, 1]} : vector<4x16xf32> to vector<1x16xf32>
    %267 = vector.broadcast %265 : vector<16x1xf32> to vector<16x16xf32>
    %268 = vector.broadcast %266 : vector<1x16xf32> to vector<16x16xf32>
    %269 = arith.addf %267, %268 : vector<16x16xf32>
    %cst_80 = arith.constant 0.000000e+00 : f32
    %270 = vector.broadcast %cst_80 : f32 to vector<16x16xf32>
    %271 = arith.cmpf ogt, %269, %270 : vector<16x16xf32>
    %cst_81 = arith.constant 2.000000e-01 : f32
    %272 = vector.broadcast %cst_81 : f32 to vector<16x16xf32>
    %273 = arith.mulf %272, %269 : vector<16x16xf32>
    %274 = arith.select %271, %269, %273 : vector<16x16xi1>, vector<16x16xf32>
    %cst_82 = arith.constant -1.000000e+09 : f32
    %275 = vector.broadcast %cst_82 : f32 to vector<16x16xf32>
    %276 = arith.select %2, %274, %275 : vector<16x16xi1>, vector<16x16xf32>
    %cst_83 = arith.constant dense<0xFF800000> : vector<16xf32>
    %277 = vector.multi_reduction <maximumf>, %276, %cst_83 [1] : vector<16x16xf32> to vector<16xf32>
    %278 = vector.shape_cast %277 : vector<16xf32> to vector<16x1xf32>
    %279 = vector.broadcast %278 : vector<16x1xf32> to vector<16x16xf32>
    %280 = arith.subf %276, %279 : vector<16x16xf32>
    %281 = math.exp %280 : vector<16x16xf32>
    %cst_84 = arith.constant dense<0.000000e+00> : vector<16xf32>
    %282 = vector.multi_reduction <add>, %281, %cst_84 [1] : vector<16x16xf32> to vector<16xf32>
    %283 = vector.shape_cast %282 : vector<16xf32> to vector<16x1xf32>
    %284 = tpu.reciprocal %283 {approx = true} : vector<16x1xf32> -> vector<16x1xf32>
    %285 = arith.truncf %281 : vector<16x16xf32> to vector<16x16xbf16>
    %286 = vector.extract_strided_slice %235 {offsets = [0, 8], sizes = [16, 8], strides = [1, 1]} : vector<16x32xbf16> to vector<16x8xbf16>
    %cst_85 = arith.constant dense<0.000000e+00> : vector<16x8xf32>
    %287 = tpu.matmul %285, %286, %cst_85 {dimension_numbers = #tpu.dot_dimension_numbers<[1], [0], [0], [1], [0, 0, 1, 1], [], []>} : vector<16x16xbf16>, vector<16x8xbf16>, vector<16x8xf32> -> vector<16x8xf32>
    %288 = vector.broadcast %284 : vector<16x1xf32> to vector<16x8xf32>
    %289 = arith.mulf %287, %288 : vector<16x8xf32>
    %290 = vector.extract_strided_slice %237 {offsets = [0, 2], sizes = [16, 1], strides = [1, 1]} : vector<16x4xf32> to vector<16x1xf32>
    %291 = vector.extract_strided_slice %239 {offsets = [2, 0], sizes = [1, 16], strides = [1, 1]} : vector<4x16xf32> to vector<1x16xf32>
    %292 = vector.broadcast %290 : vector<16x1xf32> to vector<16x16xf32>
    %293 = vector.broadcast %291 : vector<1x16xf32> to vector<16x16xf32>
    %294 = arith.addf %292, %293 : vector<16x16xf32>
    %cst_86 = arith.constant 0.000000e+00 : f32
    %295 = vector.broadcast %cst_86 : f32 to vector<16x16xf32>
    %296 = arith.cmpf ogt, %294, %295 : vector<16x16xf32>
    %cst_87 = arith.constant 2.000000e-01 : f32
    %297 = vector.broadcast %cst_87 : f32 to vector<16x16xf32>
    %298 = arith.mulf %297, %294 : vector<16x16xf32>
    %299 = arith.select %296, %294, %298 : vector<16x16xi1>, vector<16x16xf32>
    %cst_88 = arith.constant -1.000000e+09 : f32
    %300 = vector.broadcast %cst_88 : f32 to vector<16x16xf32>
    %301 = arith.select %2, %299, %300 : vector<16x16xi1>, vector<16x16xf32>
    %cst_89 = arith.constant dense<0xFF800000> : vector<16xf32>
    %302 = vector.multi_reduction <maximumf>, %301, %cst_89 [1] : vector<16x16xf32> to vector<16xf32>
    %303 = vector.shape_cast %302 : vector<16xf32> to vector<16x1xf32>
    %304 = vector.broadcast %303 : vector<16x1xf32> to vector<16x16xf32>
    %305 = arith.subf %301, %304 : vector<16x16xf32>
    %306 = math.exp %305 : vector<16x16xf32>
    %cst_90 = arith.constant dense<0.000000e+00> : vector<16xf32>
    %307 = vector.multi_reduction <add>, %306, %cst_90 [1] : vector<16x16xf32> to vector<16xf32>
    %308 = vector.shape_cast %307 : vector<16xf32> to vector<16x1xf32>
    %309 = tpu.reciprocal %308 {approx = true} : vector<16x1xf32> -> vector<16x1xf32>
    %310 = arith.truncf %306 : vector<16x16xf32> to vector<16x16xbf16>
    %311 = vector.extract_strided_slice %235 {offsets = [0, 16], sizes = [16, 8], strides = [1, 1]} : vector<16x32xbf16> to vector<16x8xbf16>
    %cst_91 = arith.constant dense<0.000000e+00> : vector<16x8xf32>
    %312 = tpu.matmul %310, %311, %cst_91 {dimension_numbers = #tpu.dot_dimension_numbers<[1], [0], [0], [1], [0, 0, 1, 1], [], []>} : vector<16x16xbf16>, vector<16x8xbf16>, vector<16x8xf32> -> vector<16x8xf32>
    %313 = vector.broadcast %309 : vector<16x1xf32> to vector<16x8xf32>
    %314 = arith.mulf %312, %313 : vector<16x8xf32>
    %315 = vector.extract_strided_slice %237 {offsets = [0, 3], sizes = [16, 1], strides = [1, 1]} : vector<16x4xf32> to vector<16x1xf32>
    %316 = vector.extract_strided_slice %239 {offsets = [3, 0], sizes = [1, 16], strides = [1, 1]} : vector<4x16xf32> to vector<1x16xf32>
    %317 = vector.broadcast %315 : vector<16x1xf32> to vector<16x16xf32>
    %318 = vector.broadcast %316 : vector<1x16xf32> to vector<16x16xf32>
    %319 = arith.addf %317, %318 : vector<16x16xf32>
    %cst_92 = arith.constant 0.000000e+00 : f32
    %320 = vector.broadcast %cst_92 : f32 to vector<16x16xf32>
    %321 = arith.cmpf ogt, %319, %320 : vector<16x16xf32>
    %cst_93 = arith.constant 2.000000e-01 : f32
    %322 = vector.broadcast %cst_93 : f32 to vector<16x16xf32>
    %323 = arith.mulf %322, %319 : vector<16x16xf32>
    %324 = arith.select %321, %319, %323 : vector<16x16xi1>, vector<16x16xf32>
    %cst_94 = arith.constant -1.000000e+09 : f32
    %325 = vector.broadcast %cst_94 : f32 to vector<16x16xf32>
    %326 = arith.select %2, %324, %325 : vector<16x16xi1>, vector<16x16xf32>
    %cst_95 = arith.constant dense<0xFF800000> : vector<16xf32>
    %327 = vector.multi_reduction <maximumf>, %326, %cst_95 [1] : vector<16x16xf32> to vector<16xf32>
    %328 = vector.shape_cast %327 : vector<16xf32> to vector<16x1xf32>
    %329 = vector.broadcast %328 : vector<16x1xf32> to vector<16x16xf32>
    %330 = arith.subf %326, %329 : vector<16x16xf32>
    %331 = math.exp %330 : vector<16x16xf32>
    %cst_96 = arith.constant dense<0.000000e+00> : vector<16xf32>
    %332 = vector.multi_reduction <add>, %331, %cst_96 [1] : vector<16x16xf32> to vector<16xf32>
    %333 = vector.shape_cast %332 : vector<16xf32> to vector<16x1xf32>
    %334 = tpu.reciprocal %333 {approx = true} : vector<16x1xf32> -> vector<16x1xf32>
    %335 = arith.truncf %331 : vector<16x16xf32> to vector<16x16xbf16>
    %336 = vector.extract_strided_slice %235 {offsets = [0, 24], sizes = [16, 8], strides = [1, 1]} : vector<16x32xbf16> to vector<16x8xbf16>
    %cst_97 = arith.constant dense<0.000000e+00> : vector<16x8xf32>
    %337 = tpu.matmul %335, %336, %cst_97 {dimension_numbers = #tpu.dot_dimension_numbers<[1], [0], [0], [1], [0, 0, 1, 1], [], []>} : vector<16x16xbf16>, vector<16x8xbf16>, vector<16x8xf32> -> vector<16x8xf32>
    %338 = vector.broadcast %334 : vector<16x1xf32> to vector<16x8xf32>
    %339 = arith.mulf %337, %338 : vector<16x8xf32>
    %340 = tpu.concatenate %264, %289, %314, %339 in 1 : vector<16x8xf32>, vector<16x8xf32>, vector<16x8xf32>, vector<16x8xf32> -> vector<16x32xf32>
    %341 = vector.broadcast %232 : vector<1x32xf32> to vector<16x32xf32>
    %342 = arith.addf %340, %341 : vector<16x32xf32>
    %c0_98 = arith.constant 0 : index
    %c0_99 = arith.constant 0 : index
    %343 = vector.load %arg12[%c0_98, %c0_99] : memref<32x1xf32, #tpu.memory_space<vmem>>, vector<32x1xf32>
    %cst_100 = arith.constant dense<0.000000e+00> : vector<16x1xf32>
    %344 = tpu.matmul %342, %343, %cst_100 {dimension_numbers = #tpu.dot_dimension_numbers<[1], [0], [0], [1], [0, 0, 1, 1], [], []>} : vector<16x32xf32>, vector<32x1xf32>, vector<16x1xf32> -> vector<16x1xf32>
    %c0_101 = arith.constant 0 : index
    %c0_102 = arith.constant 0 : index
    %345 = vector.load %arg11[%c0_101, %c0_102] : memref<2x16xf32, #tpu.memory_space<vmem>>, vector<2x16xf32>
    %cst_103 = arith.constant dense<0.000000e+00> : vector<2x1xf32>
    %346 = tpu.matmul %345, %344, %cst_103 {dimension_numbers = #tpu.dot_dimension_numbers<[1], [0], [0], [1], [0, 0, 1, 1], [], []>} : vector<2x16xf32>, vector<16x1xf32>, vector<2x1xf32> -> vector<2x1xf32>
    %c0_104 = arith.constant 0 : index
    %c0_105 = arith.constant 0 : index
    %347 = vector.load %arg13[%c0_104, %c0_105] : memref<1x1xf32, #tpu.memory_space<vmem>>, vector<1x1xf32>
    %348 = vector.broadcast %347 : vector<1x1xf32> to vector<2x1xf32>
    %349 = arith.addf %346, %348 : vector<2x1xf32>
    %c0_106 = arith.constant 0 : index
    %c0_107 = arith.constant 0 : index
    %350 = vector.load %arg14[%c0_106, %c0_107] : memref<2x1xf32, #tpu.memory_space<vmem>>, vector<2x1xf32>
    tpu.vector_store %arg14[%c0_106, %c0_107], %349 {strides = array<i32>} : memref<2x1xf32, #tpu.memory_space<vmem>>, vector<2x1xf32>,
    return
  }
}

</mosaic_0001>

<bundles_post_ra>
// kernel: tpu_custom_call.1
= control target key start
LH: loop header
LB: loop body
LE: loop exit
PB: predicated region body
PF: predicated region fallthrough
CT: control target
= control target key end

     0   :  { %v2299_v0 = vmov 0.0   ;;  %vm2300_vm0 = vmmov 0   ;;  %vm72_vm1 = vcmask 130048   ;;  %v2301_v7 = vmov 0   ;;  %s2307_s25 = smov 104   ;;  %s2308_s26 = smov 112   ;;  %s2789_s2 = inlined_call_operand.vmem [shape: bf16[16,32], index: 2, kind: input, shape index: {}]   ;;  %s2790_s0 = inlined_call_operand.vmem [shape: f32[16,16], index: 0, kind: input, shape index: {}]   ;;  %s2791_s3 = inlined_call_operand.vmem [shape: bf16[32,8], index: 3, kind: input, shape index: {}]   ;;  %s2792_s1 = inlined_call_operand.vmem [shape: s8[16,16], index: 1, kind: input, shape index: {}]   ;;  %s2793_s5 = inlined_call_operand.vmem [shape: bf16[32,32], index: 5, kind: input, shape index: {}]   ;;  %s2794_s4 = inlined_call_operand.vmem [shape: f32[1,32], index: 4, kind: input, shape index: {}]   ;;  %s2795_s6 = inlined_call_operand.vmem [shape: bf16[32,8], index: 6, kind: input, shape index: {}]   ;;  %s2796_s8 = inlined_call_operand.vmem [shape: bf16[32,32], index: 8, kind: input, shape index: {}]   ;;  %s2797_s7 = inlined_call_operand.vmem [shape: f32[1,32], index: 7, kind: input, shape index: {}]   ;;  %s2798_s9 = inlined_call_operand.vmem [shape: bf16[32,8], index: 9, kind: input, shape index: {}]   ;;  %s2799_s12 = inlined_call_operand.vmem [shape: f32[32,1], index: 12, kind: input, shape index: {}]   ;;  %s2800_s10 = inlined_call_operand.vmem [shape: f32[1,32], index: 10, kind: input, shape index: {}]   ;;  %s2801_s13 = inlined_call_operand.<no memory space> [shape: f32[1,1], index: 13, kind: input, shape index: {}]   ;;  %s2802_s11 = inlined_call_operand.vmem [shape: f32[2,16], index: 11, kind: input, shape index: {}]   ;;  %s2803_s14 = inlined_call_operand.vmem [shape: f32[2,1], index: 14, kind: output, shape index: {}]  }
   0x1   :  { %2019 = vmatprep.subr.bf16.mxu0 %v2299_v0  ;;  %v2192_v1 = vld [vmem:[%s2789_s2] sm:$0xff]   ;;  %2021 = vmatprep.mubr.msk.bf16.mxu0 %vm2300_vm0, %v2299_v0  ;;  %v57_v3 = vld [vmem:[%s2790_s0 + $0x8] sm:$0xff]  ;;  %vm130_vm2 = vcmask 261120   ;;  %v2302_v13 = vmov 1   ;;  %v2304_v17 = vmov 2   ;;  %v2305_v19 = vmov 3  }
   0x2   :  { %v56_v2 = vld [vmem:[%s2790_s0] sm:$0xff]  ;;  %2025 = vmatprep.subr.bf16.mxu1 %v2299_v0  ;;  %2029 = vmatprep.mubr.msk.bf16.mxu1 %vm2300_vm0, %v2299_v0  ;;  %v2193_v5 = vld [vmem:[%s2791_s3 + $0x8] sm:$0xff]   ;;  %v223_v23 = vlaneseq  ;;  %s2309_s27 = smov 8   ;;  %s2310_s30 = smov 16   ;;  %vm611_vm15 = vcmask 64512  }
   0x3   :  { %2020 = vmatpush3.bf16.msra.mxu0 %v2192_v1  ;;  %v65_v4 = vpack.c.bf16 %v57_v3, %v56_v2  ;;  %2026 = vmatpush3.bf16.msra.mxu1 %v2193_v5  ;;  %v2194_v6 = vld [vmem:[%s2791_s3] sm:$0xff]   ;;  %s2303_s3 = smov 124   ;;  %s2311_s17 = smov 24  }
   0x4   :  { %2033 = vmatprep.subr.bf16.mxu0 %v2299_v0  ;;  %2027 = vmatprep.subr.bf16.mxu1 %v2299_v0  ;;  %v52_v26 = vld [vmem:[%s2792_s1] sm:$0x3]  ;;  %v53_v27 = vld [vmem:[%s2792_s1 + $0x2] sm:$0x3]  ;;  %v224_v28 = vshrl.u32 %v223_v23, 7  ;;  %s2306_s1 = smov 120  }
   0x5   :  { %2168 = vset.pattern.permute.xlu1 %v2301_v7  ;;  %2169 = vset.pattern.permute.xlu0 %v2302_v13  ;;  %vm54_vm3 = vnez %v52_v26  ;;  %vm55_vm4 = vnez %v53_v27 }
   0x6   :  { %2022 = vmatmul.mubr.msk.bf16.vlgmr.msra.gmra.mxu0 %vm72_vm1, %v65_v4  ;;  %v235_v31 = vsel %vm54_vm3, 16843009, %v2301_v7  ;;  %v236_v32 = vsel %vm55_vm4, 16843009, %v2301_v7  ;;  %v2442_v33 = vsub.s32 0, %v224_v28  ;;  %v2469_v51 = vsub.s32 1, %v224_v28 }
   0x7   :  { %2035 = vmatprep.mubr.msk.bf16.mxu0 %vm2300_vm0, %v2299_v0  ;;  %2028 = vmatpush3.bf16.msra.mxu1 %v2194_v6  ;;  %v237_v34 = vunpack.c.0.s8 %v235_v31  ;;  %v238_v35 = vunpack.c.0.s8 %v236_v32  ;;  %v2472_v53 = vsub.s32 2, %v224_v28  ;;  %v2475_v59 = vsub.s32 3, %v224_v28 }
   0x8   :  { %2039 = vmatprep.subr.bf16.mxu1 %v2299_v0  ;;  %vm616_vm3 = vcmask 195584  }
   0x9   :  { %vm2445_vm5 = vcmp.ne.s32.totalorder %v237_v34, 0  ;;  %vm2449_vm6 = vcmp.ne.s32.totalorder %v238_v35, 0 }
  0xc6   :  { %v110_v8 = vpop.f32.mrf.mxu0 }
  0xc8   :  { %v2023_v9 = vpop.f32.mrf.mxu0 }
  0xca   :  { %v113_v10 = vpop.f32.mrf.mxu0 }
  0xcb   :  { %v2415_v11 = vpack.c.bf16 %v113_v10, %v110_v8 }
  0xcc   :  { %v2024_v12 = vpop.f32.mrf.mxu0 }
  0xcd   :  { %2030 = vmatmul.mubr.msk.bf16.vlgmr.msra.gmra.mxu1 %vm130_vm2, %v2415_v11  ;;  %2034 = vmatpush3.bf16.msra.mxu0 %v2415_v11 }
  0xce   :  { %2041 = vmatprep.mubr.msk.bf16.mxu1 %vm2300_vm0, %v2299_v0  ;;  %2045 = vmatprep.subr.bf16.mxu0 %v2299_v0 }
 0x18d   :  { %v168_v14 = vpop.f32.mrf.mxu1 }
 0x18e   :  { %216 = vperm.xlu1 %2168, %v168_v14   ;;  %177 = vrot.lane.b32.xlu0 %v168_v14, %s2303_s3 }
 0x18f   :  { %v2031_v15 = vpop.f32.mrf.mxu1 }
 0x191   :  { %v171_v16 = vpop.f32.mrf.mxu1 }
 0x192   :  { %2170 = vset.pattern.permute.xlu1 %v2304_v17  ;;  %179 = vrot.lane.b32.xlu0 %v171_v16, %s2303_s3 }
 0x193   :  { %404 = vperm.xlu1 %2170, %v168_v14   ;;  %v2032_v18 = vpop.f32.mrf.mxu1 }
 0x196   :  { %311 = vperm.xlu0 %2169, %v168_v14  }
 0x197   :  { %2171 = vset.pattern.permute.xlu1 %v2305_v19 }
 0x198   :  { %496 = vperm.xlu1 %2171, %v168_v14  }
 0x19a   :  { %2174 = vset.pattern.permute.xlu0 %v2304_v17 }
 0x19b   :  { %408 = vperm.xlu0 %2174, %v171_v16  }
 0x19c   :  { %2172 = vset.pattern.permute.xlu1 %v2301_v7 }
 0x19d   :  { %220 = vperm.xlu1 %2172, %v171_v16  }
 0x1a1   :  { %2173 = vset.pattern.permute.xlu1 %v2302_v13 }
 0x1a2   :  { %315 = vperm.xlu1 %2173, %v171_v16  }
 0x1a6   :  { %2175 = vset.pattern.permute.xlu1 %v2305_v19 }
 0x1a7   :  { %500 = vperm.xlu1 %2175, %v171_v16  }
 0x1ab   :  { %2176 = vset.pattern.permute.xlu1 %v2301_v7 }
 0x200   :  { %v178_v20 = vpop.permute.xlu0 %177 }
 0x201   :  { %183 = vxpose.xlu0.b32.start [1/2] (short) (narrow) %v178_v20, 8 }
 0x204   :  { %v180_v21 = vpop.permute.xlu0 %179 }
 0x205   :  { %184 = vxpose.xlu0.b32.end [2/2] (short) (narrow) %v180_v21, 8 }
 0x209   :  { %v217_v22 = vpop.permute.xlu1 %216 }
 0x20e   :  { %v405_v24 = vpop.permute.xlu1 %404 }
 0x211   :  { %v312_v25 = vpop.permute.xlu0 %311 }
 0x213   :  { %v497_v29 = vpop.permute.xlu1 %496 }
 0x216   :  { %v409_v30 = vpop.permute.xlu0 %408 }
 0x218   :  { %v221_v38 = vpop.permute.xlu1 %220 }
 0x21d   :  { %v316_v55 = vpop.permute.xlu1 %315 }
 0x222   :  { %v501_v14 = vpop.permute.xlu1 %500 }
 0x22e   :  { %2178 = vset.pattern.permute.xlu0 %v2301_v7 }
 0x27d   :  { %v199_v36 = vpop.trf.xlu0 }
 0x27e   :  { %v226_v37 = vrot.slane %v199_v36, %v2442_v33  ;;  %v321_v52 = vrot.slane %v199_v36, %v2469_v51  ;;  %v414_v56 = vrot.slane %v199_v36, %v2472_v53  ;;  %v506_v1 = vrot.slane %v199_v36, %v2475_v59 }
 0x280   :  { %v228_v39 = vadd.f32 %v226_v37, %v221_v38  ;;  %v227_v40 = vadd.f32 %v226_v37, %v217_v22  ;;  %v322_v54 = vadd.f32 %v321_v52, %v312_v25  ;;  %v323_v58 = vadd.f32 %v321_v52, %v316_v55 }
 0x281   :  { %v415_v62 = vadd.f32 %v414_v56, %v405_v24  ;;  %v416_v4 = vadd.f32 %v414_v56, %v409_v30  ;;  %v507_v10 = vadd.f32 %v506_v1, %v497_v29  ;;  %v508_v20 = vadd.f32 %v506_v1, %v501_v14 }
 0x282   :  { %vm230_vm7 = vcmp.gt.f32.partialorder %v228_v39, 0.0  ;;  %v232_v43 = vmul.f32 0.2, %v228_v39  ;;  %vm229_vm8 = vcmp.gt.f32.partialorder %v227_v40, 0.0  ;;  %v231_v44 = vmul.f32 0.2, %v227_v40 }
 0x283   :  { %v326_v57 = vmul.f32 0.2, %v322_v54  ;;  %vm324_vm9 = vcmp.gt.f32.partialorder %v322_v54, 0.0  ;;  %v327_v61 = vmul.f32 0.2, %v323_v58  ;;  %vm325_vm10 = vcmp.gt.f32.partialorder %v323_v58, 0.0 }
 0x284   :  { %v234_v45 = vsel %vm230_vm7, %v228_v39, %v232_v43  ;;  %v233_v46 = vsel %vm229_vm8, %v227_v40, %v231_v44  ;;  %v419_v3 = vmul.f32 0.2, %v415_v62  ;;  %vm417_vm11 = vcmp.gt.f32.partialorder %v415_v62, 0.0 }
 0x285   :  { %v2455_v47 = vsel %vm2449_vm6, %v234_v45, -1e+09  ;;  %v2459_v48 = vsel %vm2445_vm5, %v233_v46, -1e+09  ;;  %v328_v60 = vsel %vm324_vm9, %v322_v54, %v326_v57  ;;  %v329_v2 = vsel %vm325_vm10, %v323_v58, %v327_v61 }
 0x286   :  { %v246_v49 = vsel %vm72_vm1, %v2455_v47, -inf  ;;  %v243_v50 = vsel %vm72_vm1, %v2459_v48, -inf  ;;  %v330_v63 = vsel %vm2445_vm5, %v328_v60, -1e+09  ;;  %v331_v6 = vsel %vm2449_vm6, %v329_v2, -1e+09 }
 0x287   :  { %247 = vmax.xlane.f32.xlu0 %v246_v49  ;;  %244 = vmax.xlane.f32.xlu1 %v243_v50  ;;  %v332_v5 = vsel %vm72_vm1, %v330_v63, -inf  ;;  %v421_v8 = vsel %vm417_vm11, %v415_v62, %v419_v3  ;;  %v420_v9 = vmul.f32 0.2, %v416_v4  ;;  %vm418_vm12 = vcmp.gt.f32.partialorder %v416_v4, 0.0 }
 0x288   :  { %v335_v12 = vsel %vm72_vm1, %v331_v6, -inf  ;;  %v423_v15 = vsel %vm2445_vm5, %v421_v8, -1e+09  ;;  %v511_v18 = vmul.f32 0.2, %v507_v10  ;;  %vm509_vm13 = vcmp.gt.f32.partialorder %v507_v10, 0.0 }
 0x289   :  { %v422_v16 = vsel %vm418_vm12, %v416_v4, %v420_v9  ;;  %v425_v21 = vsel %vm72_vm1, %v423_v15, -inf  ;;  %v512_v24 = vmul.f32 0.2, %v508_v20  ;;  %vm510_vm14 = vcmp.gt.f32.partialorder %v508_v20, 0.0 }
 0x28a   :  { %v424_v22 = vsel %vm2449_vm6, %v422_v16, -1e+09  ;;  %v513_v23 = vsel %vm509_vm13, %v507_v10, %v511_v18 }
 0x28b   :  { %v428_v25 = vsel %vm72_vm1, %v424_v22, -inf  ;;  %v515_v26 = vsel %vm2445_vm5, %v513_v23, -1e+09  ;;  %v514_v27 = vsel %vm510_vm14, %v508_v20, %v512_v24 }
 0x28c   :  { %v517_v28 = vsel %vm72_vm1, %v515_v26, -inf  ;;  %v516_v29 = vsel %vm2449_vm6, %v514_v27, -1e+09 }
 0x28d   :  { %v520_v30 = vsel %vm72_vm1, %v516_v29, -inf }
 0x298   :  { %354 = vrot.lane.b32.xlu1 %v2415_v11, %s2306_s1 }
 0x29d   :  { %538 = vrot.lane.b32.xlu0 %v2415_v11, %s2307_s25 }
 0x2bc   :  { %333 = vmax.xlane.f32.xlu1 %v332_v5 }
 0x2c0   :  { %336 = vmax.xlane.f32.xlu1 %v335_v12 }
 0x2c4   :  { %426 = vmax.xlane.f32.xlu1 %v425_v21 }
 0x2c8   :  { %429 = vmax.xlane.f32.xlu1 %v428_v25 }
 0x2cc   :  { %518 = vmax.xlane.f32.xlu1 %v517_v28 }
 0x2d0   :  { %521 = vmax.xlane.f32.xlu1 %v520_v30 }
 0x2e1   :  { %446 = vrot.lane.b32.xlu1 %v2415_v11, %s2308_s26 }
 0x310   :  { %v248_v31 = vpop.xlane.xlu0 %247  ;;  %v245_v32 = vpop.xlane.xlu1 %244 }
 0x311   :  { %v250_v34 = vsub.f32 %v2455_v47, %v248_v31  ;;  %v249_v35 = vsub.f32 %v2459_v48, %v245_v32 }
 0x313   :  { %v253_v36 = vmul.f32 1.442695, %v250_v34  ;;  %v251_v37 = vmul.f32 1.442695, %v249_v35 }
 0x314   :  { %v355_v38 = vpop.permute.xlu1 %354  ;;  %v539_v8 = vpop.permute.xlu0 %538 }
 0x315   :  { %2203 = vpow2.f32 %v253_v36  ;;  %2040 = vmatpush3.bf16.msra.mxu1 %v355_v38 }
 0x316   :  { %2205 = vpow2.f32 %v251_v37  ;;  %2051 = vmatprep.subr.bf16.mxu1 %v2299_v0 }
 0x322   :  { %v2501_v39 = vpop.eup %2203 }
 0x323   :  { %v2206_v40 = vpop.eup %2205  ;;  %v258_v24 = vsel %vm72_vm1, %v2501_v39, 0.0 }
 0x324   :  { %v263_v43 = vpack.c.bf16 %v2501_v39, %v2206_v40  ;;  %v255_v10 = vsel %vm72_vm1, %v2206_v40, 0.0 }
 0x326   :  { %2036 = vmatmul.mubr.msk.bf16.vlgmr.msra.gmra.mxu0 %vm72_vm1, %v263_v43 }
 0x327   :  { %2047 = vmatprep.mubr.msk.bf16.mxu0 %vm2300_vm0, %v2299_v0 }
 0x345   :  { %v334_v11 = vpop.xlane.xlu1 %333 }
 0x346   :  { %v338_v44 = vsub.f32 %v330_v63, %v334_v11 }
 0x348   :  { %v340_v45 = vmul.f32 1.442695, %v338_v44 }
 0x349   :  { %v337_v46 = vpop.xlane.xlu1 %336 }
 0x34a   :  { %2207 = vpow2.f32 %v340_v45  ;;  %v339_v47 = vsub.f32 %v331_v6, %v337_v46 }
 0x34c   :  { %v342_v48 = vmul.f32 1.442695, %v339_v47  ;;  %v2195_v47 = vld [vmem:[%s2793_s5 + $0x8] sm:$0xff]  }
 0x34d   :  { %v427_v49 = vpop.xlane.xlu1 %426 }
 0x34e   :  { %2209 = vpow2.f32 %v342_v48  ;;  %v431_v50 = vsub.f32 %v423_v15, %v427_v49 }
 0x350   :  { %v433_v52 = vmul.f32 1.442695, %v431_v50 }
 0x351   :  { %v430_v54 = vpop.xlane.xlu1 %429 }
 0x352   :  { %2211 = vpow2.f32 %v433_v52  ;;  %v432_v55 = vsub.f32 %v424_v22, %v430_v54 }
 0x354   :  { %v435_v56 = vmul.f32 1.442695, %v432_v55  ;;  %v2196_v55 = vld [vmem:[%s2793_s5] sm:$0xff]  }
 0x355   :  { %v519_v57 = vpop.xlane.xlu1 %518 }
 0x356   :  { %2213 = vpow2.f32 %v435_v56  ;;  %v523_v58 = vsub.f32 %v515_v26, %v519_v57 }
 0x357   :  { %v2208_v60 = vpop.eup %2207 }
 0x358   :  { %v525_v61 = vmul.f32 1.442695, %v523_v58  ;;  %v344_v62 = vsel %vm72_vm1, %v2208_v60, 0.0 }
 0x359   :  { %345 = vadd.xlane.f32.xlu1 %v344_v62  ;;  %v522_v63 = vpop.xlane.xlu1 %521 }
 0x35a   :  { %2215 = vpow2.f32 %v525_v61  ;;  %v524_v1 = vsub.f32 %v516_v29, %v522_v63 }
 0x35b   :  { %v2210_v2 = vpop.eup %2209 }
 0x35c   :  { %v527_v3 = vmul.f32 1.442695, %v524_v1  ;;  %v347_v4 = vsel %vm72_vm1, %v2210_v2, 0.0  ;;  %v352_v5 = vpack.c.bf16 %v2210_v2, %v2208_v60 }
 0x35d   :  { %348 = vadd.xlane.f32.xlu0 %v347_v4  ;;  %v447_v6 = vpop.permute.xlu1 %446 }
 0x35e   :  { %2217 = vpow2.f32 %v527_v3  ;;  %2042 = vmatmul.mubr.msk.bf16.vlgmr.msra.gmra.mxu1 %vm72_vm1, %v352_v5  ;;  %2046 = vmatpush3.bf16.msra.mxu0 %v447_v6 }
 0x35f   :  { %v2212_v9 = vpop.eup %2211  ;;  %2052 = vmatpush3.bf16.msra.mxu1 %v539_v8  ;;  %2053 = vmatprep.mubr.msk.bf16.mxu1 %vm2300_vm0, %v2299_v0 }
 0x360   :  { %v437_v12 = vsel %vm72_vm1, %v2212_v9, 0.0  ;;  %2057 = vmatprep.subr.bf16.mxu0 %v2299_v0  ;;  %2065 = vmatprep.subr.bf16.mxu1 %v2299_v0 }
 0x361   :  { %256 = vadd.xlane.f32.xlu0 %v255_v10  ;;  %438 = vadd.xlane.f32.xlu1 %v437_v12 }
 0x363   :  { %v2214_v14 = vpop.eup %2213 }
 0x364   :  { %v440_v15 = vsel %vm72_vm1, %v2214_v14, 0.0  ;;  %v445_v16 = vpack.c.bf16 %v2214_v14, %v2212_v9 }
 0x365   :  { %441 = vadd.xlane.f32.xlu1 %v440_v15 }
 0x366   :  { %2048 = vmatmul.mubr.msk.bf16.vlgmr.msra.gmra.mxu0 %vm72_vm1, %v445_v16 }
 0x367   :  { %v2216_v18 = vpop.eup %2215  ;;  %2061 = vmatprep.mubr.msk.bf16.mxu0 %vm2300_vm0, %v2299_v0  ;;  %2058 = vmatpush3.bf16.msra.mxu0 %v2195_v47 }
 0x368   :  { %v529_v20 = vsel %vm72_vm1, %v2216_v18, 0.0  ;;  %2059 = vmatprep.subr.bf16.mxu0 %v2299_v0 }
 0x369   :  { %530 = vadd.xlane.f32.xlu1 %v529_v20 }
 0x36b   :  { %v2218_v21 = vpop.eup %2217  ;;  %2060 = vmatpush3.bf16.msra.mxu0 %v2196_v55 }
 0x36c   :  { %v532_v22 = vsel %vm72_vm1, %v2218_v21, 0.0  ;;  %v537_v23 = vpack.c.bf16 %v2218_v21, %v2216_v18  ;;  %2073 = vmatprep.subr.bf16.mxu0 %v2299_v0 }
 0x36d   :  { %533 = vadd.xlane.f32.xlu1 %v532_v22  ;;  %v1942_v22 = vld [vmem:[%s2794_s4] ss:$0 sm:$0xff] }
 0x36e   :  { %2054 = vmatmul.mubr.msk.bf16.vlgmr.msra.gmra.mxu1 %vm72_vm1, %v537_v23 }
 0x36f   :  { %2069 = vmatprep.mubr.msk.bf16.mxu1 %vm2300_vm0, %v2299_v0 }
 0x371   :  { %259 = vadd.xlane.f32.xlu1 %v258_v24 }
 0x3e2   :  { %v346_v29 = vpop.xlane.xlu1 %345 }
 0x3e3   :  { %2219 = vrcp.f32 %v346_v29 }
 0x3e6   :  { %v2527_v25 = vpop.f32.mrf.mxu0  ;;  %v349_v31 = vpop.xlane.xlu0 %348 }
 0x3e7   :  { %2221 = vrcp.f32 %v349_v31  ;;  %v2198_v31 = vld [vmem:[%s2795_s6] sm:$0xff]  }
 0x3e8   :  { %v2037_v26 = vpop.f32.mrf.mxu0 }
 0x3ea   :  { %v2529_v27 = vpop.f32.mrf.mxu0  ;;  %v439_v30 = vpop.xlane.xlu1 %438 }
 0x3eb   :  { %2223 = vrcp.f32 %v439_v30  ;;  %v257_v3 = vpop.xlane.xlu0 %256 }
 0x3ec   :  { %v2038_v28 = vpop.f32.mrf.mxu0 }
 0x3ee   :  { %v442_v32 = vpop.xlane.xlu1 %441 }
 0x3ef   :  { %2225 = vrcp.f32 %v442_v32 }
 0x3f0   :  { %v2220_v35 = vpop.eup %2219 }
 0x3f2   :  { %v531_v34 = vpop.xlane.xlu1 %530 }
 0x3f3   :  { %2227 = vrcp.f32 %v531_v34 }
 0x3f4   :  { %v2222_v39 = vpop.eup %2221 }
 0x3f6   :  { %v534_v40 = vpop.xlane.xlu1 %533 }
 0x3f7   :  { %2229 = vrcp.f32 %v534_v40 }
 0x3f8   :  { %v2224_v45 = vpop.eup %2223  ;;  %2231 = vrcp.f32 %v257_v3 }
 0x3fa   :  { %v260_v4 = vpop.xlane.xlu1 %259 }
 0x3fb   :  { %2233 = vrcp.f32 %v260_v4 }
 0x3fc   :  { %v2226_v50 = vpop.eup %2225 }
 0x400   :  { %v2228_v57 = vpop.eup %2227 }
 0x404   :  { %v2230_v62 = vpop.eup %2229 }
 0x405   :  { %v2232_v6 = vpop.eup %2231 }
 0x406   :  { %v308_v12 = vmul.f32 %v2232_v6, %v2527_v25 }
 0x408   :  { %v2234_v10 = vpop.eup %2233 }
 0x409   :  { %v309_v18 = vmul.f32 %v2234_v10, %v2529_v27  ;;  %v2197_v27 = vld [vmem:[%s2795_s6 + $0x8] sm:$0xff]  }
 0x40a   :  { %2066 = vmatpush3.bf16.msra.mxu1 %v2197_v27 }
 0x40b   :  { %2067 = vmatprep.subr.bf16.mxu1 %v2299_v0 }
 0x40e   :  { %2068 = vmatpush3.bf16.msra.mxu1 %v2198_v31 }
 0x40f   :  { %2079 = vmatprep.subr.bf16.mxu1 %v2299_v0 }
 0x41e   :  { %v394_v36 = vpop.f32.mrf.mxu1 }
 0x41f   :  { %v401_v37 = vmul.f32 %v2220_v35, %v394_v36 }
 0x420   :  { %v2043_v38 = vpop.f32.mrf.mxu1 }
 0x421   :  { %589 = vrot.lane.b32.xlu0 %v401_v37, %s2309_s27 }
 0x422   :  { %v397_v43 = vpop.f32.mrf.mxu1 }
 0x423   :  { %v402_v11 = vmul.f32 %v2222_v39, %v397_v43 }
 0x424   :  { %v2044_v44 = vpop.f32.mrf.mxu1 }
 0x425   :  { %591 = vrot.lane.b32.xlu1 %v402_v11, %s2309_s27 }
 0x426   :  { %v486_v46 = vpop.f32.mrf.mxu0 }
 0x427   :  { %v493_v48 = vmul.f32 %v2224_v45, %v486_v46 }
 0x428   :  { %v2049_v49 = vpop.f32.mrf.mxu0 }
 0x429   :  { %597 = vrot.lane.b32.xlu1 %v493_v48, %s2310_s30 }
 0x42a   :  { %v489_v52 = vpop.f32.mrf.mxu0 }
 0x42b   :  { %v494_v54 = vmul.f32 %v2226_v50, %v489_v52 }
 0x42c   :  { %v2050_v56 = vpop.f32.mrf.mxu0 }
 0x42d   :  { %599 = vrot.lane.b32.xlu0 %v494_v54, %s2310_s30 }
 0x42e   :  { %v578_v58 = vpop.f32.mrf.mxu1 }
 0x42f   :  { %v585_v60 = vmul.f32 %v2228_v57, %v578_v58 }
 0x430   :  { %v2055_v61 = vpop.f32.mrf.mxu1 }
 0x431   :  { %605 = vrot.lane.b32.xlu1 %v585_v60, %s2311_s17 }
 0x432   :  { %v581_v63 = vpop.f32.mrf.mxu1 }
 0x433   :  { %v586_v1 = vmul.f32 %v2230_v62, %v581_v63 }
 0x434   :  { %v2056_v2 = vpop.f32.mrf.mxu1 }
 0x435   :  { %607 = vrot.lane.b32.xlu0 %v586_v1, %s2311_s17 }
 0x493   :  { %v590_v8 = vpop.permute.xlu0 %589 }
 0x494   :  { %v612_v16 = vsel %vm611_vm15, %v308_v12, %v590_v8 }
 0x497   :  { %v592_v5 = vpop.permute.xlu1 %591 }
 0x498   :  { %v613_v21 = vsel %vm611_vm15, %v309_v18, %v592_v5 }
 0x49b   :  { %v598_v9 = vpop.permute.xlu1 %597 }
 0x49c   :  { %v614_v20 = vsel %vm72_vm1, %v612_v16, %v598_v9 }
 0x49f   :  { %v600_v14 = vpop.permute.xlu0 %599 }
 0x4a0   :  { %v615_v24 = vsel %vm72_vm1, %v613_v21, %v600_v14 }
 0x4a3   :  { %v606_v15 = vpop.permute.xlu1 %605 }
 0x4a4   :  { %v617_v23 = vsel %vm616_vm3, %v614_v20, %v606_v15 }
 0x4a5   :  { %v625_v28 = vadd.f32 %v1942_v22, %v617_v23 }
 0x4a7   :  { %v608_v25 = vpop.permute.xlu0 %607 }
 0x4a8   :  { %v618_v26 = vsel %vm616_vm3, %v615_v24, %v608_v25 }
 0x4a9   :  { %v626_v29 = vadd.f32 %v1942_v22, %v618_v26 }
 0x4ab   :  { %v636_v30 = vpack.c.bf16 %v626_v29, %v625_v28 }
 0x4ad   :  { %2062 = vmatmul.mubr.msk.bf16.vlgmr.msra.gmra.mxu0 %vm130_vm2, %v636_v30 }
 0x4ae   :  { %2075 = vmatprep.mubr.msk.bf16.mxu0 %vm2300_vm0, %v2299_v0 }
 0x56d   :  { %v686_v32 = vpop.f32.mrf.mxu0 }
 0x56f   :  { %v2063_v34 = vpop.f32.mrf.mxu0 }
 0x571   :  { %v689_v35 = vpop.f32.mrf.mxu0 }
 0x572   :  { %v2567_v36 = vpack.c.bf16 %v689_v35, %v686_v32 }
 0x573   :  { %v2064_v37 = vpop.f32.mrf.mxu0 }
 0x574   :  { %2070 = vmatmul.mubr.msk.bf16.vlgmr.msra.gmra.mxu1 %vm130_vm2, %v2567_v36  ;;  %2074 = vmatpush3.bf16.msra.mxu0 %v2567_v36 }
 0x575   :  { %2085 = vmatprep.subr.bf16.mxu0 %v2299_v0  ;;  %2081 = vmatprep.mubr.msk.bf16.mxu1 %vm2300_vm0, %v2299_v0 }
 0x634   :  { %v743_v38 = vpop.f32.mrf.mxu1 }
 0x635   :  { %752 = vrot.lane.b32.xlu1 %v743_v38, %s2303_s3 }
 0x636   :  { %v2071_v39 = vpop.f32.mrf.mxu1 }
 0x638   :  { %v746_v40 = vpop.f32.mrf.mxu1 }
 0x639   :  { %791 = vperm.xlu1 %2176, %v743_v38   ;;  %754 = vrot.lane.b32.xlu0 %v746_v40, %s2303_s3 }
 0x63a   :  { %v2072_v43 = vpop.f32.mrf.mxu1 }
 0x63d   :  { %2177 = vset.pattern.permute.xlu1 %v2302_v13  ;;  %795 = vperm.xlu0 %2178, %v746_v40  }
 0x63e   :  { %880 = vperm.xlu1 %2177, %v743_v38  }
 0x641   :  { %2179 = vset.pattern.permute.xlu0 %v2304_v17 }
 0x642   :  { %2180 = vset.pattern.permute.xlu1 %v2305_v19  ;;  %973 = vperm.xlu0 %2179, %v743_v38  }
 0x643   :  { %1065 = vperm.xlu1 %2180, %v743_v38  }
 0x646   :  { %2183 = vset.pattern.permute.xlu0 %v2305_v19 }
 0x647   :  { %2181 = vset.pattern.permute.xlu1 %v2302_v13  ;;  %1069 = vperm.xlu0 %2183, %v746_v40  }
 0x648   :  { %884 = vperm.xlu1 %2181, %v746_v40  }
 0x64b   :  { %923 = vrot.lane.b32.xlu0 %v2567_v36, %s2306_s1 }
 0x64c   :  { %2182 = vset.pattern.permute.xlu1 %v2304_v17  ;;  %2186 = vset.pattern.permute.xlu0 %v2301_v7 }
 0x64d   :  { %977 = vperm.xlu1 %2182, %v746_v40  }
 0x6a7   :  { %v753_v11 = vpop.permute.xlu1 %752 }
 0x6a8   :  { %758 = vxpose.xlu1.b32.start [1/2] (short) (narrow) %v753_v11, 8 }
 0x6ab   :  { %v755_v44 = vpop.permute.xlu0 %754 }
 0x6ac   :  { %759 = vxpose.xlu1.b32.end [2/2] (short) (narrow) %v755_v44, 8 }
 0x6b4   :  { %v792_v49 = vpop.permute.xlu1 %791 }
 0x6b8   :  { %v796_v45 = vpop.permute.xlu0 %795 }
 0x6b9   :  { %v881_v50 = vpop.permute.xlu1 %880 }
 0x6bd   :  { %v974_v46 = vpop.permute.xlu0 %973 }
 0x6be   :  { %v1066_v52 = vpop.permute.xlu1 %1065 }
 0x6c2   :  { %v1070_v47 = vpop.permute.xlu0 %1069 }
 0x6c3   :  { %v885_v54 = vpop.permute.xlu1 %884 }
 0x6c6   :  { %v924_v48 = vpop.permute.xlu0 %923 }
 0x6c7   :  { %2080 = vmatpush3.bf16.msra.mxu1 %v924_v48 }
 0x6c8   :  { %2091 = vmatprep.subr.bf16.mxu1 %v2299_v0  ;;  %v978_v55 = vpop.permute.xlu1 %977 }
 0x6ca   :  { %2184 = vset.pattern.permute.xlu1 %v2301_v7 }
 0x724   :  { %v774_v56 = vpop.trf.xlu1 }
 0x725   :  { %v801_v57 = vrot.slane %v774_v56, %v2442_v33  ;;  %v890_v58 = vrot.slane %v774_v56, %v2469_v51  ;;  %v983_v60 = vrot.slane %v774_v56, %v2472_v53  ;;  %v1075_v18 = vrot.slane %v774_v56, %v2475_v59 }
 0x727   :  { %v892_v61 = vadd.f32 %v890_v58, %v885_v54  ;;  %v802_v62 = vadd.f32 %v801_v57, %v792_v49  ;;  %v803_v63 = vadd.f32 %v801_v57, %v796_v45  ;;  %v891_v1 = vadd.f32 %v890_v58, %v881_v50 }
 0x728   :  { %v984_v8 = vadd.f32 %v983_v60, %v974_v46  ;;  %v985_v22 = vadd.f32 %v983_v60, %v978_v55  ;;  %v1076_v28 = vadd.f32 %v1075_v18, %v1066_v52  ;;  %v1077_v32 = vadd.f32 %v1075_v18, %v1070_v47 }
 0x729   :  { %vm894_vm4 = vcmp.gt.f32.partialorder %v892_v61, 0.0  ;;  %v896_v2 = vmul.f32 0.2, %v892_v61  ;;  %vm804_vm7 = vcmp.gt.f32.partialorder %v802_v62, 0.0  ;;  %v806_v7 = vmul.f32 0.2, %v802_v62 }
 0x72a   :  { %vm805_vm8 = vcmp.gt.f32.partialorder %v803_v63, 0.0  ;;  %v807_v3 = vmul.f32 0.2, %v803_v63  ;;  %v895_v6 = vmul.f32 0.2, %v891_v1  ;;  %vm893_vm9 = vcmp.gt.f32.partialorder %v891_v1, 0.0 }
 0x72b   :  { %v898_v4 = vsel %vm894_vm4, %v892_v61, %v896_v2  ;;  %v808_v5 = vsel %vm804_vm7, %v802_v62, %v806_v7  ;;  %v988_v21 = vmul.f32 0.2, %v984_v8  ;;  %vm986_vm10 = vcmp.gt.f32.partialorder %v984_v8, 0.0 }
 0x72c   :  { %v900_v9 = vsel %vm2449_vm6, %v898_v4, -1e+09  ;;  %v810_v10 = vsel %vm2445_vm5, %v808_v5, -1e+09  ;;  %v809_v12 = vsel %vm805_vm8, %v803_v63, %v807_v3  ;;  %v897_v20 = vsel %vm893_vm9, %v891_v1, %v895_v6 }
 0x72d   :  { %v904_v14 = vsel %vm72_vm1, %v900_v9, -inf  ;;  %v812_v15 = vsel %vm72_vm1, %v810_v10, -inf  ;;  %v811_v16 = vsel %vm2449_vm6, %v809_v12, -1e+09  ;;  %v899_v24 = vsel %vm2445_vm5, %v897_v20, -1e+09 }
 0x72e   :  { %905 = vmax.xlane.f32.xlu1 %v904_v14  ;;  %813 = vmax.xlane.f32.xlu0 %v812_v15  ;;  %v815_v23 = vsel %vm72_vm1, %v811_v16, -inf  ;;  %v990_v25 = vsel %vm986_vm10, %v984_v8, %v988_v21  ;;  %v989_v26 = vmul.f32 0.2, %v985_v22  ;;  %vm987_vm11 = vcmp.gt.f32.partialorder %v985_v22, 0.0 }
 0x72f   :  { %v901_v29 = vsel %vm72_vm1, %v899_v24, -inf  ;;  %v992_v30 = vsel %vm2445_vm5, %v990_v25, -1e+09  ;;  %v1080_v31 = vmul.f32 0.2, %v1076_v28  ;;  %vm1078_vm12 = vcmp.gt.f32.partialorder %v1076_v28, 0.0 }
 0x730   :  { %v991_v27 = vsel %vm987_vm11, %v985_v22, %v989_v26  ;;  %v994_v34 = vsel %vm72_vm1, %v992_v30, -inf  ;;  %v1081_v38 = vmul.f32 0.2, %v1077_v32  ;;  %vm1079_vm13 = vcmp.gt.f32.partialorder %v1077_v32, 0.0 }
 0x731   :  { %v993_v35 = vsel %vm2449_vm6, %v991_v27, -1e+09  ;;  %v1082_v37 = vsel %vm1078_vm12, %v1076_v28, %v1080_v31 }
 0x732   :  { %816 = vmax.xlane.f32.xlu0 %v815_v23  ;;  %v997_v39 = vsel %vm72_vm1, %v993_v35, -inf  ;;  %v1084_v40 = vsel %vm2445_vm5, %v1082_v37, -1e+09  ;;  %v1083_v43 = vsel %vm1079_vm13, %v1077_v32, %v1081_v38 }
 0x733   :  { %v1086_v11 = vsel %vm72_vm1, %v1084_v40, -inf  ;;  %v1085_v44 = vsel %vm2449_vm6, %v1083_v43, -1e+09 }
 0x734   :  { %v1089_v45 = vsel %vm72_vm1, %v1085_v44, -inf }
 0x736   :  { %902 = vmax.xlane.f32.xlu0 %v901_v29 }
 0x73a   :  { %995 = vmax.xlane.f32.xlu0 %v994_v34 }
 0x73e   :  { %998 = vmax.xlane.f32.xlu0 %v997_v39 }
 0x73f   :  { %1015 = vrot.lane.b32.xlu1 %v2567_v36, %s2308_s26 }
 0x742   :  { %1087 = vmax.xlane.f32.xlu0 %v1086_v11 }
 0x746   :  { %1090 = vmax.xlane.f32.xlu0 %v1089_v45 }
 0x75c   :  { %1107 = vrot.lane.b32.xlu0 %v2567_v36, %s2307_s25 }
 0x7b7   :  { %v906_v46 = vpop.xlane.xlu1 %905  ;;  %v814_v47 = vpop.xlane.xlu0 %813 }
 0x7b8   :  { %v908_v48 = vsub.f32 %v900_v9, %v906_v46  ;;  %v818_v49 = vsub.f32 %v810_v10, %v814_v47 }
 0x7ba   :  { %v911_v50 = vmul.f32 1.442695, %v908_v48  ;;  %v820_v52 = vmul.f32 1.442695, %v818_v49 }
 0x7bb   :  { %v817_v54 = vpop.xlane.xlu0 %816  ;;  %v1016_v15 = vpop.permute.xlu1 %1015 }
 0x7bc   :  { %2235 = vpow2.f32 %v911_v50  ;;  %v819_v55 = vsub.f32 %v811_v16, %v817_v54 }
 0x7bd   :  { %2237 = vpow2.f32 %v820_v52 }
 0x7be   :  { %v822_v56 = vmul.f32 1.442695, %v819_v55 }
 0x7bf   :  { %v903_v57 = vpop.xlane.xlu0 %902 }
 0x7c0   :  { %2239 = vpow2.f32 %v822_v56  ;;  %v907_v58 = vsub.f32 %v899_v24, %v903_v57 }
 0x7c2   :  { %v909_v60 = vmul.f32 1.442695, %v907_v58 }
 0x7c3   :  { %v996_v61 = vpop.xlane.xlu0 %995 }
 0x7c4   :  { %2241 = vpow2.f32 %v909_v60  ;;  %v1000_v62 = vsub.f32 %v992_v30, %v996_v61  ;;  %v2199_v61 = vld [vmem:[%s2796_s8 + $0x8] sm:$0xff]  }
 0x7c6   :  { %v1002_v63 = vmul.f32 1.442695, %v1000_v62 }
 0x7c7   :  { %v999_v36 = vpop.xlane.xlu0 %998 }
 0x7c8   :  { %2243 = vpow2.f32 %v1002_v63  ;;  %v1001_v1 = vsub.f32 %v993_v35, %v999_v36 }
 0x7c9   :  { %v2236_v2 = vpop.eup %2235 }
 0x7ca   :  { %v1004_v7 = vmul.f32 1.442695, %v1001_v1  ;;  %v916_v3 = vsel %vm72_vm1, %v2236_v2, 0.0  ;;  %v2238_v5 = vpop.eup %2237 }
 0x7cb   :  { %917 = vadd.xlane.f32.xlu1 %v916_v3  ;;  %v1088_v4 = vpop.xlane.xlu0 %1087  ;;  %v824_v35 = vsel %vm72_vm1, %v2238_v5, 0.0 }
 0x7cc   :  { %2245 = vpow2.f32 %v1004_v7  ;;  %v1092_v6 = vsub.f32 %v1084_v40, %v1088_v4  ;;  %v2200_v7 = vld [vmem:[%s2796_s8] sm:$0xff]  }
 0x7cd   :  { %v2240_v8 = vpop.eup %2239 }
 0x7ce   :  { %v1094_v9 = vmul.f32 1.442695, %v1092_v6  ;;  %v827_v10 = vsel %vm72_vm1, %v2240_v8, 0.0  ;;  %v832_v12 = vpack.c.bf16 %v2240_v8, %v2238_v5 }
 0x7cf   :  { %828 = vadd.xlane.f32.xlu1 %v827_v10  ;;  %v1091_v14 = vpop.xlane.xlu0 %1090 }
 0x7d0   :  { %2247 = vpow2.f32 %v1094_v9  ;;  %v1093_v16 = vsub.f32 %v1085_v44, %v1091_v14  ;;  %2076 = vmatmul.mubr.msk.bf16.vlgmr.msra.gmra.mxu0 %vm72_vm1, %v832_v12 }
 0x7d1   :  { %v2242_v18 = vpop.eup %2241  ;;  %2086 = vmatpush3.bf16.msra.mxu0 %v1016_v15  ;;  %2087 = vmatprep.mubr.msk.bf16.mxu0 %vm2300_vm0, %v2299_v0 }
 0x7d2   :  { %v1096_v20 = vmul.f32 1.442695, %v1093_v16  ;;  %v913_v21 = vsel %vm72_vm1, %v2242_v18, 0.0  ;;  %v921_v22 = vpack.c.bf16 %v2236_v2, %v2242_v18  ;;  %2097 = vmatprep.subr.bf16.mxu0 %v2299_v0 }
 0x7d3   :  { %914 = vadd.xlane.f32.xlu0 %v913_v21  ;;  %v1108_v23 = vpop.permute.xlu0 %1107 }
 0x7d4   :  { %2249 = vpow2.f32 %v1096_v20  ;;  %2082 = vmatmul.mubr.msk.bf16.vlgmr.msra.gmra.mxu1 %vm72_vm1, %v921_v22 }
 0x7d5   :  { %v2244_v24 = vpop.eup %2243  ;;  %2092 = vmatpush3.bf16.msra.mxu1 %v1108_v23  ;;  %2093 = vmatprep.mubr.msk.bf16.mxu1 %vm2300_vm0, %v2299_v0 }
 0x7d6   :  { %v1006_v25 = vsel %vm72_vm1, %v2244_v24, 0.0  ;;  %2105 = vmatprep.subr.bf16.mxu1 %v2299_v0 }
 0x7d7   :  { %1007 = vadd.xlane.f32.xlu0 %v1006_v25 }
 0x7d9   :  { %v2246_v26 = vpop.eup %2245 }
 0x7da   :  { %v1009_v28 = vsel %vm72_vm1, %v2246_v26, 0.0  ;;  %v1014_v29 = vpack.c.bf16 %v2246_v26, %v2244_v24 }
 0x7db   :  { %1010 = vadd.xlane.f32.xlu0 %v1009_v28 }
 0x7dc   :  { %2088 = vmatmul.mubr.msk.bf16.vlgmr.msra.gmra.mxu0 %vm72_vm1, %v1014_v29 }
 0x7dd   :  { %v2248_v30 = vpop.eup %2247  ;;  %2101 = vmatprep.mubr.msk.bf16.mxu0 %vm2300_vm0, %v2299_v0  ;;  %2098 = vmatpush3.bf16.msra.mxu0 %v2199_v61 }
 0x7de   :  { %v1098_v27 = vsel %vm72_vm1, %v2248_v30, 0.0  ;;  %2099 = vmatprep.subr.bf16.mxu0 %v2299_v0 }
 0x7df   :  { %1099 = vadd.xlane.f32.xlu0 %v1098_v27 }
 0x7e1   :  { %v2250_v31 = vpop.eup %2249  ;;  %2100 = vmatpush3.bf16.msra.mxu0 %v2200_v7 }
 0x7e2   :  { %v1101_v32 = vsel %vm72_vm1, %v2250_v31, 0.0  ;;  %v1106_v34 = vpack.c.bf16 %v2250_v31, %v2248_v30  ;;  %2113 = vmatprep.subr.bf16.mxu0 %v2299_v0  ;;  %v1953_v31 = vld [vmem:[%s2797_s7] ss:$0 sm:$0xff] }
 0x7e3   :  { %1102 = vadd.xlane.f32.xlu0 %v1101_v32 }
 0x7e4   :  { %2094 = vmatmul.mubr.msk.bf16.vlgmr.msra.gmra.mxu1 %vm72_vm1, %v1106_v34 }
 0x7e5   :  { %2109 = vmatprep.mubr.msk.bf16.mxu1 %vm2300_vm0, %v2299_v0 }
 0x7e7   :  { %825 = vadd.xlane.f32.xlu0 %v824_v35 }
 0x854   :  { %v918_v39 = vpop.xlane.xlu1 %917 }
 0x858   :  { %v829_v16 = vpop.xlane.xlu1 %828 }
 0x85c   :  { %v915_v37 = vpop.xlane.xlu0 %914 }
 0x85d   :  { %2251 = vrcp.f32 %v915_v37 }
 0x85e   :  { %2253 = vrcp.f32 %v918_v39 }
 0x860   :  { %v1008_v38 = vpop.xlane.xlu0 %1007 }
 0x861   :  { %2255 = vrcp.f32 %v1008_v38 }
 0x864   :  { %v1011_v40 = vpop.xlane.xlu0 %1010 }
 0x865   :  { %2257 = vrcp.f32 %v1011_v40 }
 0x868   :  { %v1100_v11 = vpop.xlane.xlu0 %1099 }
 0x869   :  { %2259 = vrcp.f32 %v1100_v11  ;;  %v2202_v11 = vld [vmem:[%s2798_s9] sm:$0xff]  }
 0x86a   :  { %v2252_v45 = vpop.eup %2251 }
 0x86b   :  { %v2254_v52 = vpop.eup %2253 }
 0x86c   :  { %v1103_v54 = vpop.xlane.xlu0 %1102 }
 0x86d   :  { %2261 = vrcp.f32 %v1103_v54 }
 0x86e   :  { %v2256_v58 = vpop.eup %2255 }
 0x870   :  { %v826_v15 = vpop.xlane.xlu0 %825 }
 0x871   :  { %2263 = vrcp.f32 %v826_v15 }
 0x872   :  { %v2258_v36 = vpop.eup %2257  ;;  %2265 = vrcp.f32 %v829_v16 }
 0x876   :  { %v2260_v4 = vpop.eup %2259 }
 0x87a   :  { %v2262_v9 = vpop.eup %2261 }
 0x87e   :  { %v2264_v22 = vpop.eup %2263 }
 0x87f   :  { %v2266_v24 = vpop.eup %2265 }
 0x890   :  { %v870_v43 = vpop.f32.mrf.mxu0 }
 0x891   :  { %v877_v23 = vmul.f32 %v2264_v22, %v870_v43  ;;  %v2201_v43 = vld [vmem:[%s2798_s9 + $0x8] sm:$0xff]  }
 0x892   :  { %v2077_v44 = vpop.f32.mrf.mxu0  ;;  %2106 = vmatpush3.bf16.msra.mxu1 %v2201_v43 }
 0x893   :  { %2107 = vmatprep.subr.bf16.mxu1 %v2299_v0 }
 0x894   :  { %v873_v46 = vpop.f32.mrf.mxu0  ;;  %v963_v47 = vpop.f32.mrf.mxu1 }
 0x895   :  { %v970_v48 = vmul.f32 %v2252_v45, %v963_v47  ;;  %v878_v28 = vmul.f32 %v2266_v24, %v873_v46 }
 0x896   :  { %v2078_v49 = vpop.f32.mrf.mxu0  ;;  %v2083_v50 = vpop.f32.mrf.mxu1  ;;  %2108 = vmatpush3.bf16.msra.mxu1 %v2202_v11 }
 0x897   :  { %1158 = vrot.lane.b32.xlu0 %v970_v48, %s2309_s27  ;;  %2119 = vmatprep.subr.bf16.mxu1 %v2299_v0 }
 0x898   :  { %v966_v55 = vpop.f32.mrf.mxu1 }
 0x899   :  { %v971_v56 = vmul.f32 %v2254_v52, %v966_v55 }
 0x89a   :  { %v2084_v57 = vpop.f32.mrf.mxu1 }
 0x89b   :  { %1160 = vrot.lane.b32.xlu1 %v971_v56, %s2309_s27 }
 0x89c   :  { %v1055_v60 = vpop.f32.mrf.mxu0 }
 0x89d   :  { %v1062_v62 = vmul.f32 %v2256_v58, %v1055_v60 }
 0x89e   :  { %v2089_v63 = vpop.f32.mrf.mxu0 }
 0x89f   :  { %1166 = vrot.lane.b32.xlu1 %v1062_v62, %s2310_s30 }
 0x8a0   :  { %v1058_v1 = vpop.f32.mrf.mxu0 }
 0x8a1   :  { %v1063_v2 = vmul.f32 %v2258_v36, %v1058_v1 }
 0x8a2   :  { %v2090_v3 = vpop.f32.mrf.mxu0 }
 0x8a3   :  { %1168 = vrot.lane.b32.xlu0 %v1063_v2, %s2310_s30 }
 0x8a4   :  { %v1147_v5 = vpop.f32.mrf.mxu1 }
 0x8a5   :  { %v1154_v6 = vmul.f32 %v2260_v4, %v1147_v5 }
 0x8a6   :  { %v2095_v8 = vpop.f32.mrf.mxu1 }
 0x8a7   :  { %1174 = vrot.lane.b32.xlu1 %v1154_v6, %s2311_s17 }
 0x8a8   :  { %v1150_v10 = vpop.f32.mrf.mxu1 }
 0x8a9   :  { %v1155_v12 = vmul.f32 %v2262_v9, %v1150_v10 }
 0x8aa   :  { %v2096_v14 = vpop.f32.mrf.mxu1 }
 0x8ab   :  { %1176 = vrot.lane.b32.xlu0 %v1155_v12, %s2311_s17 }
 0x909   :  { %v1159_v20 = vpop.permute.xlu0 %1158 }
 0x90a   :  { %v1180_v29 = vsel %vm611_vm15, %v877_v23, %v1159_v20 }
 0x90d   :  { %v1161_v18 = vpop.permute.xlu1 %1160 }
 0x90e   :  { %v1181_v27 = vsel %vm611_vm15, %v878_v28, %v1161_v18 }
 0x911   :  { %v1167_v21 = vpop.permute.xlu1 %1166 }
 0x912   :  { %v1182_v30 = vsel %vm72_vm1, %v1180_v29, %v1167_v21 }
 0x915   :  { %v1169_v25 = vpop.permute.xlu0 %1168 }
 0x916   :  { %v1183_v34 = vsel %vm72_vm1, %v1181_v27, %v1169_v25 }
 0x919   :  { %v1175_v26 = vpop.permute.xlu1 %1174 }
 0x91a   :  { %v1184_v32 = vsel %vm616_vm3, %v1182_v30, %v1175_v26 }
 0x91b   :  { %v1192_v38 = vadd.f32 %v1953_v31, %v1184_v32 }
 0x91d   :  { %v1177_v35 = vpop.permute.xlu0 %1176 }
 0x91e   :  { %v1185_v37 = vsel %vm616_vm3, %v1183_v34, %v1177_v35 }
 0x91f   :  { %v1193_v39 = vadd.f32 %v1953_v31, %v1185_v37 }
 0x921   :  { %v1203_v40 = vpack.c.bf16 %v1193_v39, %v1192_v38 }
 0x923   :  { %2102 = vmatmul.mubr.msk.bf16.vlgmr.msra.gmra.mxu0 %vm130_vm2, %v1203_v40 }
 0x924   :  { %2115 = vmatprep.mubr.msk.bf16.mxu0 %vm2300_vm0, %v2299_v0 }
 0x9e3   :  { %v1253_v44 = vpop.f32.mrf.mxu0 }
 0x9e5   :  { %v2103_v45 = vpop.f32.mrf.mxu0 }
 0x9e7   :  { %v1256_v46 = vpop.f32.mrf.mxu0 }
 0x9e8   :  { %v2676_v47 = vpack.c.bf16 %v1256_v46, %v1253_v44 }
 0x9e9   :  { %v2104_v48 = vpop.f32.mrf.mxu0 }
 0x9ea   :  { %2110 = vmatmul.mubr.msk.bf16.vlgmr.msra.gmra.mxu1 %vm130_vm2, %v2676_v47  ;;  %2114 = vmatpush3.bf16.msra.mxu0 %v2676_v47 }
 0x9eb   :  { %2125 = vmatprep.subr.bf16.mxu0 %v2299_v0  ;;  %2121 = vmatprep.mubr.msk.bf16.mxu1 %vm2300_vm0, %v2299_v0 }
 0xaaa   :  { %v1310_v49 = vpop.f32.mrf.mxu1 }
 0xaab   :  { %1319 = vrot.lane.b32.xlu1 %v1310_v49, %s2303_s3 }
 0xaac   :  { %v2111_v50 = vpop.f32.mrf.mxu1 }
 0xaae   :  { %v1313_v52 = vpop.f32.mrf.mxu1 }
 0xaaf   :  { %1358 = vperm.xlu1 %2184, %v1310_v49   ;;  %1321 = vrot.lane.b32.xlu0 %v1313_v52, %s2303_s3 }
 0xab0   :  { %v2112_v54 = vpop.f32.mrf.mxu1 }
 0xab3   :  { %2185 = vset.pattern.permute.xlu1 %v2302_v13  ;;  %1362 = vperm.xlu0 %2186, %v1313_v52  }
 0xab4   :  { %1447 = vperm.xlu1 %2185, %v1310_v49  }
 0xab7   :  { %2187 = vset.pattern.permute.xlu0 %v2304_v17 }
 0xab8   :  { %2188 = vset.pattern.permute.xlu1 %v2305_v19  ;;  %1540 = vperm.xlu0 %2187, %v1310_v49  }
 0xab9   :  { %1632 = vperm.xlu1 %2188, %v1310_v49  }
 0xabc   :  { %2191 = vset.pattern.permute.xlu0 %v2305_v19 }
 0xabd   :  { %2189 = vset.pattern.permute.xlu1 %v2302_v13  ;;  %1636 = vperm.xlu0 %2191, %v1313_v52  }
 0xabe   :  { %1451 = vperm.xlu1 %2189, %v1313_v52  }
 0xac1   :  { %1490 = vrot.lane.b32.xlu0 %v2676_v47, %s2306_s1 }
 0xac2   :  { %2190 = vset.pattern.permute.xlu1 %v2304_v17 }
 0xac3   :  { %1544 = vperm.xlu1 %2190, %v1313_v52  }
 0xb1d   :  { %v1320_v55 = vpop.permute.xlu1 %1319 }
 0xb1e   :  { %1325 = vxpose.xlu1.b32.start [1/2] (short) (narrow) %v1320_v55, 8 }
 0xb21   :  { %v1322_v56 = vpop.permute.xlu0 %1321 }
 0xb22   :  { %1326 = vxpose.xlu1.b32.end [2/2] (short) (narrow) %v1322_v56, 8 }
 0xb2a   :  { %v1359_v13 = vpop.permute.xlu1 %1358 }
 0xb2e   :  { %v1363_v57 = vpop.permute.xlu0 %1362 }
 0xb2f   :  { %v1448_v19 = vpop.permute.xlu1 %1447 }
 0xb33   :  { %v1541_v58 = vpop.permute.xlu0 %1540 }
 0xb34   :  { %v1633_v62 = vpop.permute.xlu1 %1632 }
 0xb38   :  { %v1637_v60 = vpop.permute.xlu0 %1636 }
 0xb39   :  { %v1452_v63 = vpop.permute.xlu1 %1451 }
 0xb3c   :  { %v1491_v61 = vpop.permute.xlu0 %1490 }
 0xb3d   :  { %2120 = vmatpush3.bf16.msra.mxu1 %v1491_v61 }
 0xb3e   :  { %2131 = vmatprep.subr.bf16.mxu1 %v2299_v0  ;;  %v1545_v36 = vpop.permute.xlu1 %1544 }
 0xb9a   :  { %v1341_v1 = vpop.trf.xlu1 }
 0xb9b   :  { %v1368_v17 = vrot.slane %v1341_v1, %v2442_v33  ;;  %v1457_v2 = vrot.slane %v1341_v1, %v2469_v51  ;;  %v1550_v7 = vrot.slane %v1341_v1, %v2472_v53  ;;  %v1642_v22 = vrot.slane %v1341_v1, %v2475_v59 }
 0xb9d   :  { %v1459_v3 = vadd.f32 %v1457_v2, %v1452_v63  ;;  %v1369_v4 = vadd.f32 %v1368_v17, %v1359_v13  ;;  %v1370_v5 = vadd.f32 %v1368_v17, %v1363_v57  ;;  %v1458_v6 = vadd.f32 %v1457_v2, %v1448_v19 }
 0xb9e   :  { %v1551_v16 = vadd.f32 %v1550_v7, %v1541_v58  ;;  %v1552_v25 = vadd.f32 %v1550_v7, %v1545_v36  ;;  %v1643_v27 = vadd.f32 %v1642_v22, %v1633_v62  ;;  %v1644_v35 = vadd.f32 %v1642_v22, %v1637_v60 }
 0xb9f   :  { %vm1461_vm14 = vcmp.gt.f32.partialorder %v1459_v3, 0.0  ;;  %v1463_v8 = vmul.f32 0.2, %v1459_v3  ;;  %vm1371_vm4 = vcmp.gt.f32.partialorder %v1369_v4, 0.0  ;;  %v1373_v9 = vmul.f32 0.2, %v1369_v4 }
 0xba0   :  { %vm1372_vm7 = vcmp.gt.f32.partialorder %v1370_v5, 0.0  ;;  %v1374_v10 = vmul.f32 0.2, %v1370_v5  ;;  %v1462_v15 = vmul.f32 0.2, %v1458_v6  ;;  %vm1460_vm8 = vcmp.gt.f32.partialorder %v1458_v6, 0.0 }
 0xba1   :  { %v1465_v12 = vsel %vm1461_vm14, %v1459_v3, %v1463_v8  ;;  %v1375_v14 = vsel %vm1371_vm4, %v1369_v4, %v1373_v9  ;;  %v1555_v24 = vmul.f32 0.2, %v1551_v16  ;;  %vm1553_vm9 = vcmp.gt.f32.partialorder %v1551_v16, 0.0 }
 0xba2   :  { %v1467_v33 = vsel %vm2449_vm6, %v1465_v12, -1e+09  ;;  %v1377_v51 = vsel %vm2445_vm5, %v1375_v14, -1e+09  ;;  %v1376_v53 = vsel %vm1372_vm7, %v1370_v5, %v1374_v10  ;;  %v1464_v23 = vsel %vm1460_vm8, %v1458_v6, %v1462_v15 }
 0xba3   :  { %v1471_v18 = vsel %vm72_vm1, %v1467_v33, -inf  ;;  %v1379_v20 = vsel %vm72_vm1, %v1377_v51, -inf  ;;  %v1378_v21 = vsel %vm2449_vm6, %v1376_v53, -1e+09  ;;  %v1466_v28 = vsel %vm2445_vm5, %v1464_v23, -1e+09 }
 0xba4   :  { %1472 = vmax.xlane.f32.xlu1 %v1471_v18  ;;  %1380 = vmax.xlane.f32.xlu0 %v1379_v20  ;;  %v1382_v26 = vsel %vm72_vm1, %v1378_v21, -inf  ;;  %v1557_v29 = vsel %vm1553_vm9, %v1551_v16, %v1555_v24  ;;  %v1556_v30 = vmul.f32 0.2, %v1552_v25  ;;  %vm1554_vm10 = vcmp.gt.f32.partialorder %v1552_v25, 0.0 }
 0xba5   :  { %v1468_v31 = vsel %vm72_vm1, %v1466_v28, -inf  ;;  %v1559_v59 = vsel %vm2445_vm5, %v1557_v29, -1e+09  ;;  %v1647_v34 = vmul.f32 0.2, %v1643_v27  ;;  %vm1645_vm11 = vcmp.gt.f32.partialorder %v1643_v27, 0.0 }
 0xba6   :  { %v1558_v32 = vsel %vm1554_vm10, %v1552_v25, %v1556_v30  ;;  %v1561_v37 = vsel %vm72_vm1, %v1559_v59, -inf  ;;  %v1648_v40 = vmul.f32 0.2, %v1644_v35  ;;  %vm1646_vm12 = vcmp.gt.f32.partialorder %v1644_v35, 0.0 }
 0xba7   :  { %v1560_v38 = vsel %vm2449_vm6, %v1558_v32, -1e+09  ;;  %v1649_v39 = vsel %vm1645_vm11, %v1643_v27, %v1647_v34 }
 0xba8   :  { %1383 = vmax.xlane.f32.xlu0 %v1382_v26  ;;  %v1564_v43 = vsel %vm72_vm1, %v1560_v38, -inf  ;;  %v1651_v11 = vsel %vm2445_vm5, %v1649_v39, -1e+09  ;;  %v1650_v44 = vsel %vm1646_vm12, %v1644_v35, %v1648_v40 }
 0xba9   :  { %v1653_v45 = vsel %vm72_vm1, %v1651_v11, -inf  ;;  %v1652_v46 = vsel %vm2449_vm6, %v1650_v44, -1e+09  ;;  %v1764_v44 = vld [vmem:[%s2799_s12 + $0x18] sm:$0xff] }
 0xbaa   :  { %v1656_v48 = vsel %vm72_vm1, %v1652_v46, -inf }
 0xbac   :  { %1469 = vmax.xlane.f32.xlu0 %v1468_v31 }
 0xbb0   :  { %1562 = vmax.xlane.f32.xlu0 %v1561_v37 }
 0xbb4   :  { %1565 = vmax.xlane.f32.xlu0 %v1564_v43 }
 0xbb5   :  { %1582 = vrot.lane.b32.xlu1 %v2676_v47, %s2308_s26 }
 0xbb8   :  { %1654 = vmax.xlane.f32.xlu0 %v1653_v45 }
 0xbbc   :  { %1657 = vmax.xlane.f32.xlu0 %v1656_v48 }
 0xbd2   :  { %1674 = vrot.lane.b32.xlu0 %v2676_v47, %s2307_s25 }
 0xc2d   :  { %v1473_v49 = vpop.xlane.xlu1 %1472  ;;  %v1381_v50 = vpop.xlane.xlu0 %1380 }
 0xc2e   :  { %v1475_v41 = vsub.f32 %v1467_v33, %v1473_v49  ;;  %v1385_v52 = vsub.f32 %v1377_v51, %v1381_v50 }
 0xc30   :  { %v1478_v54 = vmul.f32 1.442695, %v1475_v41  ;;  %v1387_v55 = vmul.f32 1.442695, %v1385_v52  ;;  %v1763_v41 = vld [vmem:[%s2799_s12 + $0x10] sm:$0xff]  ;;  %v1762_v52 = vld [vmem:[%s2799_s12 + $0x8] sm:$0xff] }
 0xc31   :  { %v1384_v56 = vpop.xlane.xlu0 %1383  ;;  %v1583_v10 = vpop.permute.xlu1 %1582 }
 0xc32   :  { %2267 = vpow2.f32 %v1478_v54  ;;  %v1386_v57 = vsub.f32 %v1378_v21, %v1384_v56 }
 0xc33   :  { %2269 = vpow2.f32 %v1387_v55 }
 0xc34   :  { %v1389_v58 = vmul.f32 1.442695, %v1386_v57 }
 0xc35   :  { %v1470_v60 = vpop.xlane.xlu0 %1469 }
 0xc36   :  { %2271 = vpow2.f32 %v1389_v58  ;;  %v1474_v42 = vsub.f32 %v1466_v28, %v1470_v60  ;;  %v1761_v58 = vld [vmem:[%s2799_s12] sm:$0xff] }
 0xc38   :  { %v1476_v61 = vmul.f32 1.442695, %v1474_v42 }
 0xc39   :  { %v1563_v13 = vpop.xlane.xlu0 %1562 }
 0xc3a   :  { %2273 = vpow2.f32 %v1476_v61  ;;  %v1567_v19 = vsub.f32 %v1559_v59, %v1563_v13 }
 0xc3c   :  { %v1569_v62 = vmul.f32 1.442695, %v1567_v19 }
 0xc3d   :  { %v1566_v47 = vpop.xlane.xlu0 %1565 }
 0xc3e   :  { %2275 = vpow2.f32 %v1569_v62  ;;  %v1568_v63 = vsub.f32 %v1560_v38, %v1566_v47 }
 0xc3f   :  { %v2268_v36 = vpop.eup %2267 }
 0xc40   :  { %v1571_v1 = vmul.f32 1.442695, %v1568_v63  ;;  %v1483_v17 = vsel %vm72_vm1, %v2268_v36, 0.0  ;;  %v2270_v7 = vpop.eup %2269 }
 0xc41   :  { %1484 = vadd.xlane.f32.xlu1 %v1483_v17  ;;  %v1655_v2 = vpop.xlane.xlu0 %1654  ;;  %v1391_v29 = vsel %vm72_vm1, %v2270_v7, 0.0 }
 0xc42   :  { %2277 = vpow2.f32 %v1571_v1  ;;  %v1659_v3 = vsub.f32 %v1651_v11, %v1655_v2 }
 0xc43   :  { %v2272_v4 = vpop.eup %2271 }
 0xc44   :  { %v1661_v5 = vmul.f32 1.442695, %v1659_v3  ;;  %v1394_v6 = vsel %vm72_vm1, %v2272_v4, 0.0  ;;  %v1399_v8 = vpack.c.bf16 %v2272_v4, %v2270_v7 }
 0xc45   :  { %1395 = vadd.xlane.f32.xlu1 %v1394_v6  ;;  %v1658_v9 = vpop.xlane.xlu0 %1657 }
 0xc46   :  { %2279 = vpow2.f32 %v1661_v5  ;;  %v1660_v12 = vsub.f32 %v1652_v46, %v1658_v9  ;;  %2116 = vmatmul.mubr.msk.bf16.vlgmr.msra.gmra.mxu0 %vm72_vm1, %v1399_v8 }
 0xc47   :  { %v2274_v14 = vpop.eup %2273  ;;  %2126 = vmatpush3.bf16.msra.mxu0 %v1583_v10  ;;  %2127 = vmatprep.mubr.msk.bf16.mxu0 %vm2300_vm0, %v2299_v0 }
 0xc48   :  { %v1663_v15 = vmul.f32 1.442695, %v1660_v12  ;;  %v1480_v16 = vsel %vm72_vm1, %v2274_v14, 0.0  ;;  %v1488_v33 = vpack.c.bf16 %v2268_v36, %v2274_v14  ;;  %2137 = vmatprep.subr.mxu0 %v1764_v44  ;;  %v1964_v12 = vld [vmem:[%s2800_s10] ss:$0 sm:$0xff] }
 0xc49   :  { %1481 = vadd.xlane.f32.xlu0 %v1480_v16  ;;  %v1675_v51 = vpop.permute.xlu0 %1674 }
 0xc4a   :  { %2281 = vpow2.f32 %v1663_v15  ;;  %2122 = vmatmul.mubr.msk.bf16.vlgmr.msra.gmra.mxu1 %vm72_vm1, %v1488_v33 }
 0xc4b   :  { %v2276_v53 = vpop.eup %2275  ;;  %2132 = vmatpush3.bf16.msra.mxu1 %v1675_v51  ;;  %2133 = vmatprep.mubr.msk.bf16.mxu1 %vm2300_vm0, %v2299_v0 }
 0xc4c   :  { %v1573_v18 = vsel %vm72_vm1, %v2276_v53, 0.0 }
 0xc4d   :  { %1574 = vadd.xlane.f32.xlu0 %v1573_v18 }
 0xc4f   :  { %v2278_v20 = vpop.eup %2277 }
 0xc50   :  { %v1576_v21 = vsel %vm72_vm1, %v2278_v20, 0.0  ;;  %v1581_v22 = vpack.c.bf16 %v2278_v20, %v2276_v53 }
 0xc51   :  { %1577 = vadd.xlane.f32.xlu0 %v1576_v21 }
 0xc52   :  { %2128 = vmatmul.mubr.msk.bf16.vlgmr.msra.gmra.mxu0 %vm72_vm1, %v1581_v22 }
 0xc53   :  { %v2280_v23 = vpop.eup %2279  ;;  %2138 = vmatpush3.msra.mxu0 %v1764_v44 }
 0xc54   :  { %v1665_v24 = vsel %vm72_vm1, %v2280_v23, 0.0  ;;  %2139 = vmatprep.subr.mxu0 %v1763_v41 }
 0xc55   :  { %1666 = vadd.xlane.f32.xlu0 %v1665_v24  ;;  %2140 = vmatpush3.msra.mxu0 %v1763_v41 }
 0xc56   :  { %2141 = vmatprep.subr.mxu0 %v1762_v52 }
 0xc57   :  { %v2282_v25 = vpop.eup %2281  ;;  %2142 = vmatpush3.msra.mxu0 %v1762_v52 }
 0xc58   :  { %v1668_v26 = vsel %vm72_vm1, %v2282_v25, 0.0  ;;  %v1673_v28 = vpack.c.bf16 %v2282_v25, %v2280_v23  ;;  %2143 = vmatprep.subr.mxu0 %v1761_v58  ;;  %v19_v25 = vstv %s2801_s13 }
 0xc59   :  { %1669 = vadd.xlane.f32.xlu0 %v1668_v26  ;;  %2144 = vmatpush3.msra.mxu0 %v1761_v58  ;;  %20 = vst [vmem:[#allocation2] sm:$0x1] %v19_v25 }
 0xc5a   :  { %2134 = vmatmul.mubr.msk.bf16.vlgmr.msra.gmra.mxu1 %vm72_vm1, %v1673_v28  ;;  %2148 = vmatprep.subr.mxu0 %v2299_v0  ;;  %v1846_v28 = vld [vmem:[%s2802_s11] sm:$0x3] }
 0xc5d   :  { %1392 = vadd.xlane.f32.xlu0 %v1391_v29 }
 0xcca   :  { %v1485_v31 = vpop.xlane.xlu1 %1484 }
 0xcce   :  { %v1396_v3 = vpop.xlane.xlu1 %1395 }
 0xcd2   :  { %v1482_v30 = vpop.xlane.xlu0 %1481 }
 0xcd3   :  { %2283 = vrcp.f32 %v1482_v30  ;;  %v1967_v30 = vld [vmem:[#allocation2] ss:$0 sm:$0xff] }
 0xcd4   :  { %2285 = vrcp.f32 %v1485_v31 }
 0xcd6   :  { %v1575_v27 = vpop.xlane.xlu0 %1574 }
 0xcd7   :  { %2287 = vrcp.f32 %v1575_v27 }
 0xcda   :  { %v1578_v59 = vpop.xlane.xlu0 %1577 }
 0xcdb   :  { %2289 = vrcp.f32 %v1578_v59 }
 0xcde   :  { %v1667_v34 = vpop.xlane.xlu0 %1666 }
 0xcdf   :  { %2291 = vrcp.f32 %v1667_v34 }
 0xce0   :  { %v2284_v37 = vpop.eup %2283 }
 0xce1   :  { %v2286_v45 = vpop.eup %2285 }
 0xce2   :  { %v1670_v46 = vpop.xlane.xlu0 %1669 }
 0xce3   :  { %2293 = vrcp.f32 %v1670_v46 }
 0xce4   :  { %v2288_v54 = vpop.eup %2287 }
 0xce6   :  { %v1393_v7 = vpop.xlane.xlu0 %1392 }
 0xce7   :  { %2295 = vrcp.f32 %v1393_v7 }
 0xce8   :  { %v2290_v60 = vpop.eup %2289  ;;  %2297 = vrcp.f32 %v1396_v3 }
 0xcec   :  { %v2292_v19 = vpop.eup %2291 }
 0xcf0   :  { %v2294_v36 = vpop.eup %2293 }
 0xcf4   :  { %v2296_v5 = vpop.eup %2295 }
 0xcf5   :  { %v2298_v14 = vpop.eup %2297 }
 0xd06   :  { %v1437_v32 = vpop.f32.mrf.mxu0 }
 0xd07   :  { %v1444_v9 = vmul.f32 %v2296_v5, %v1437_v32 }
 0xd08   :  { %v2117_v35 = vpop.f32.mrf.mxu0 }
 0xd0a   :  { %v2743_v38 = vpop.f32.mrf.mxu0  ;;  %v1530_v39 = vpop.f32.mrf.mxu1 }
 0xd0b   :  { %v1537_v40 = vmul.f32 %v2284_v37, %v1530_v39  ;;  %v1445_v51 = vmul.f32 %v2298_v14, %v2743_v38 }
 0xd0c   :  { %v2118_v43 = vpop.f32.mrf.mxu0  ;;  %v2123_v11 = vpop.f32.mrf.mxu1 }
 0xd0d   :  { %1725 = vrot.lane.b32.xlu0 %v1537_v40, %s2309_s27 }
 0xd0e   :  { %v1533_v48 = vpop.f32.mrf.mxu1 }
 0xd0f   :  { %v1538_v49 = vmul.f32 %v2286_v45, %v1533_v48 }
 0xd10   :  { %v2124_v50 = vpop.f32.mrf.mxu1 }
 0xd11   :  { %1727 = vrot.lane.b32.xlu1 %v1538_v49, %s2309_s27 }
 0xd12   :  { %v1622_v55 = vpop.f32.mrf.mxu0 }
 0xd13   :  { %v1629_v56 = vmul.f32 %v2288_v54, %v1622_v55 }
 0xd14   :  { %v2129_v57 = vpop.f32.mrf.mxu0 }
 0xd15   :  { %1733 = vrot.lane.b32.xlu1 %v1629_v56, %s2310_s30 }
 0xd16   :  { %v1625_v42 = vpop.f32.mrf.mxu0 }
 0xd17   :  { %v1630_v61 = vmul.f32 %v2290_v60, %v1625_v42 }
 0xd18   :  { %v2130_v13 = vpop.f32.mrf.mxu0 }
 0xd19   :  { %1735 = vrot.lane.b32.xlu0 %v1630_v61, %s2310_s30 }
 0xd1a   :  { %v1714_v62 = vpop.f32.mrf.mxu1 }
 0xd1b   :  { %v1721_v47 = vmul.f32 %v2292_v19, %v1714_v62 }
 0xd1c   :  { %v2135_v63 = vpop.f32.mrf.mxu1 }
 0xd1d   :  { %1741 = vrot.lane.b32.xlu1 %v1721_v47, %s2311_s17 }
 0xd1e   :  { %v1717_v1 = vpop.f32.mrf.mxu1 }
 0xd1f   :  { %v1722_v17 = vmul.f32 %v2294_v36, %v1717_v1 }
 0xd20   :  { %v2136_v2 = vpop.f32.mrf.mxu1 }
 0xd21   :  { %1743 = vrot.lane.b32.xlu0 %v1722_v17, %s2311_s17 }
 0xd7f   :  { %v1726_v6 = vpop.permute.xlu0 %1725 }
 0xd80   :  { %v1747_v10 = vsel %vm611_vm15, %v1444_v9, %v1726_v6 }
 0xd83   :  { %v1728_v4 = vpop.permute.xlu1 %1727 }
 0xd84   :  { %v1748_v20 = vsel %vm611_vm15, %v1445_v51, %v1728_v4 }
 0xd87   :  { %v1734_v8 = vpop.permute.xlu1 %1733 }
 0xd88   :  { %v1749_v15 = vsel %vm72_vm1, %v1747_v10, %v1734_v8 }
 0xd8b   :  { %v1736_v16 = vpop.permute.xlu0 %1735 }
 0xd8c   :  { %v1750_v21 = vsel %vm72_vm1, %v1748_v20, %v1736_v16 }
 0xd8f   :  { %v1742_v33 = vpop.permute.xlu1 %1741 }
 0xd90   :  { %v1751_v53 = vsel %vm616_vm3, %v1749_v15, %v1742_v33 }
 0xd91   :  { %v1759_v18 = vadd.f32 %v1964_v12, %v1751_v53 }
 0xd93   :  { %2145 = vmatprep.mubr.msk.f32.mxu0 %vm130_vm2, %v1759_v18  ;;  %v1744_v22 = vpop.permute.xlu0 %1743 }
 0xd94   :  { %v1752_v23 = vsel %vm616_vm3, %v1750_v21, %v1744_v22 }
 0xd95   :  { %v1760_v24 = vadd.f32 %v1964_v12, %v1752_v23 }
 0xd97   :  { %2146 = vmatmul.mubr.msk.f32.vlgmr.msra.gmra.mxu0 %vm130_vm2, %v1760_v24 }
 0xd98   :  { %2152 = vmatprep.mubr.msk.f32.mxu0 %vm2300_vm0, %v2299_v0  ;;  %vm1927_vm0 = vcmask 1024  }
 0xe57   :  { %v2147_v26 = vpop.f32.mrf.mxu0 }
 0xe58   :  { %2149 = vmatpush3.msra.mxu0 %v2147_v26 }
 0xe59   :  { %v1837_v29 = vpop.f32.mrf.mxu0  ;;  %2150 = vmatprep.subr.mxu0 %v2299_v0 }
 0xe5a   :  { %2151 = vmatpush3.msra.mxu0 %v1837_v29 }
 0xe5b   :  { %2153 = vmatmul.mubr.msk.f32.vlgmr.msra.gmra.mxu0 %vm72_vm1, %v1846_v28 }
 0xf1b   :  { %v1923_v27 = vpop.f32.mrf.mxu0 }
 0xf1c   :  { %v1924_v31 = vadd.f32 %v1967_v30, %v1923_v27 }
 0xf1d   :  { %v2154_v59 = vpop.f32.mrf.mxu0 }
 0xf1e   :  { %1928 = vst.msk [vmem:[%s2803_s14] sm:$0x3] %vm1927_vm0, %v1924_v31 }

</bundles_post_ra>
